<compile_context>
chip_gen: v7x
topology: tpu7x:2x2x1
jax: 0.10.0
libtpu: 0.0.40
codegen_flags: <defaults>
</compile_context>

<pallas_src>
import functools

import jax
import jax.numpy as jnp
from jax import lax
from jax.experimental import pallas as pl
from jax.experimental.pallas import tpu as pltpu


def _channel_attention_kernel(x_ref, w1_ref, w2_ref, o_ref,
                              sum_acc, max_acc, *, hw, nb):
    """Grid = (batch blocks, spatial tiles); spatial axis is the reduction axis.

    x_ref   : (nb, C, T)   input tile (T = tile of flattened H*W)
    w1_ref  : (Cm, C)      fc1 1x1-conv weight (kernel dims squeezed)
    w2_ref  : (C, Cm)      fc2 1x1-conv weight (kernel dims squeezed)
    o_ref   : (nb, C, 1)   sigmoid channel-attention output
    sum_acc, max_acc : (nb, C, 1) f32 VMEM accumulators (resident across axis 1)
    """
    s = pl.program_id(1)
    last = pl.num_programs(1) - 1

    @pl.when(s == 0)
    def _init():
        sum_acc[...] = jnp.zeros_like(sum_acc)
        max_acc[...] = jnp.full_like(max_acc, -jnp.inf)

    x = x_ref[...].astype(jnp.float32)                          # (nb, C, T)
    sum_acc[...] = sum_acc[...] + jnp.sum(x, axis=-1, keepdims=True)
    max_acc[...] = jnp.maximum(max_acc[...],
                               jnp.max(x, axis=-1, keepdims=True))

    @pl.when(s == last)
    def _finalize():
        w1 = w1_ref[...].astype(jnp.float32)                    # (Cm, C)
        w2 = w2_ref[...].astype(jnp.float32)                    # (C, Cm)
        inv_hw = 1.0 / float(hw)
        for b in range(nb):                                     # static unroll, nb small
            mean = sum_acc[b] * inv_hw                          # (C, 1)
            mx = max_acc[b]                                     # (C, 1)
            h_avg = jnp.maximum(
                jnp.dot(w1, mean, precision=lax.Precision.HIGHEST,
                        preferred_element_type=jnp.float32), 0.0)
            h_max = jnp.maximum(
                jnp.dot(w1, mx, precision=lax.Precision.HIGHEST,
                        preferred_element_type=jnp.float32), 0.0)
            # fc2 is linear & bias-free -> fold the avg/max branches before fc2.
            logits = jnp.dot(w2, h_avg + h_max,
                             precision=lax.Precision.HIGHEST,
                             preferred_element_type=jnp.float32)  # (C, 1)
            att = 1.0 / (1.0 + jnp.exp(-logits))                  # sigmoid (EUP exp)
            o_ref[b] = att.astype(o_ref.dtype)


def _choose_blocks(n, c, hw, itemsize, budget_bytes=4 << 20):
    """Pick (batch block nb, spatial tile T) so one input block is a few MiB of
    dense, 128-lane-aligned data: large DMAs, few grid steps."""
    per_image = c * hw * itemsize
    if per_image <= budget_bytes:
        # Whole image fits: block over batch too, to amortize per-step overhead.
        max_nb = max(min(budget_bytes // per_image, 8, n), 1)
        nb = 1
        for cand in range(int(max_nb), 0, -1):
            if n % cand == 0:
                nb = cand
                break
        return nb, hw
    # Tile the flattened spatial axis with the largest 128-multiple divisor that
    # keeps the (C, T) block under budget (double-buffered by the pipeline).
    max_t = max(budget_bytes // (c * itemsize), 128)
    t = (max_t // 128) * 128
    while t >= 128:
        if hw % t == 0:
            return 1, t
        t -= 128
    # TODO(synk): mask-pad ragged spatial tails; fall back to one full slab.
    return 1, hw


def channel_attention(x, w_fc1, w_fc2):
    """ChannelAttention.forward.

    x:     (N, C, H, W)  NCHW, as in PyTorch.
    w_fc1: (C // r, C)   fc1 1x1-conv weight (kernel dims squeezed).
    w_fc2: (C, C // r)   fc2 1x1-conv weight (kernel dims squeezed).
    Returns the channel attention map, shape (N, C, 1, 1).
    """
    n, c, h, w = x.shape
    hw = h * w
    x_flat = x.reshape(n, c, hw)                # metadata-only reshape

    itemsize = jnp.dtype(x.dtype).itemsize
    nb, t = _choose_blocks(n, c, hw, itemsize)
    s_tiles = hw // t

    in_block_bytes = nb * c * t * itemsize
    vmem_limit = int(min(max(32 << 20, 2 * in_block_bytes + (4 << 20)), 100 << 20))

    kern = functools.partial(_channel_attention_kernel, hw=hw, nb=nb)

    out = pl.pallas_call(
        kern,
        out_shape=jax.ShapeDtypeStruct((n, c, 1), x.dtype),
        grid_spec=pltpu.PrefetchScalarGridSpec(
            num_scalar_prefetch=0,
            grid=(n // nb, s_tiles),
            in_specs=[
                pl.BlockSpec((nb, c, t), lambda i, s: (i, 0, s)),
                pl.BlockSpec(w_fc1.shape, lambda i, s: (0, 0)),
                pl.BlockSpec(w_fc2.shape, lambda i, s: (0, 0)),
            ],
            out_specs=pl.BlockSpec((nb, c, 1), lambda i, s: (i, 0, 0)),
            scratch_shapes=[
                pltpu.VMEM((nb, c, 1), jnp.float32),   # running sum
                pltpu.VMEM((nb, c, 1), jnp.float32),   # running max
            ],
        ),
        compiler_params=pltpu.CompilerParams(
            dimension_semantics=("parallel", "arbitrary"),
            vmem_limit_bytes=vmem_limit,
        ),
    )(x_flat, w_fc1, w_fc2)

    return out.reshape(n, c, 1, 1)


if __name__ == "__main__":
    key = jax.random.PRNGKey(0)
    k1, k2, k3 = jax.random.split(key, 3)

    # Small shapes consistent with the module (reduction_ratio=16 needs C >= 16).
    n, c, h, w = 2, 64, 16, 16
    reduction_ratio = 16
    cm = c // reduction_ratio            # 4

    x = jax.random.normal(k1, (n, c, h, w), dtype=jnp.float32)
    # Kaiming-normal-style init for the bias-free 1x1 convs.
    w_fc1 = jax.random.normal(k2, (cm, c), dtype=jnp.float32) * (2.0 / c) ** 0.5
    w_fc2 = jax.random.normal(k3, (c, cm), dtype=jnp.float32) * (2.0 / cm) ** 0.5

    y = channel_attention(x, w_fc1, w_fc2)
    y = jax.block_until_ready(y)

    # Pure-JAX reference of the PyTorch forward.
    avg = jnp.mean(x, axis=(2, 3))       # (N, C)
    mx = jnp.max(x, axis=(2, 3))         # (N, C)

    def mlp(p):
        hdd = jnp.maximum(
            jnp.dot(p, w_fc1.T, precision=lax.Precision.HIGHEST), 0.0)
        return jnp.dot(hdd, w_fc2.T, precision=lax.Precision.HIGHEST)

    ref = jax.nn.sigmoid(mlp(avg) + mlp(mx)).reshape(n, c, 1, 1)

    assert y.shape == (n, c, 1, 1)
    assert jnp.allclose(y, ref, atol=2e-5, rtol=2e-5)

    print("KERNEL_OK")
</pallas_src>

<mosaic_0001>
module attributes {stable_mosaic.version = 11 : i64} {
  func.func @_channel_attention_kernel(%arg0: i32, %arg1: i32, %arg2: memref<2x64x256xf32, #tpu.memory_space<vmem>>, %arg3: memref<4x64xf32, #tpu.memory_space<vmem>>, %arg4: memref<64x4xf32, #tpu.memory_space<vmem>>, %arg5: memref<2x64x1xf32, #tpu.memory_space<vmem>>, %arg6: memref<2x64x1xf32, #tpu.memory_space<vmem>>, %arg7: memref<2x64x1xf32, #tpu.memory_space<vmem>>) attributes {dimension_semantics = [#tpu.dimension_semantics<parallel>, #tpu.dimension_semantics<arbitrary>], iteration_bounds = array<i64: 1, 1>, scalar_prefetch = 0 : i64, scratch_operands = 2 : i64, tpu.core_type = #tpu.core_type<tc>, window_params = [{transform_indices = @transform_0, window_bounds = array<i64: 2, 64, 256>}, {pipeline_mode = #tpu.pipeline_mode<synchronous>, transform_indices = @transform_1, window_bounds = array<i64: 4, 64>}, {pipeline_mode = #tpu.pipeline_mode<synchronous>, transform_indices = @transform_2, window_bounds = array<i64: 64, 4>}, {transform_indices = @transform_3, window_bounds = array<i64: 2, 64, 1>}]} {
    %c0_i32 = arith.constant 0 : i32
    %0 = arith.cmpi eq, %arg1, %c0_i32 : i32
    %1 = arith.extui %0 : i1 to i32
    %c0_i32_0 = arith.constant 0 : i32
    %2 = arith.cmpi ne, %1, %c0_i32_0 : i32
    scf.if %2 {
      %cst_18 = arith.constant 0.000000e+00 : f32
      %17 = vector.broadcast %cst_18 : f32 to vector<2x64x1xf32>
      %c0_19 = arith.constant 0 : index
      %c0_20 = arith.constant 0 : index
      %c0_21 = arith.constant 0 : index
      %18 = vector.load %arg6[%c0_19, %c0_20, %c0_21] : memref<2x64x1xf32, #tpu.memory_space<vmem>>, vector<2x64x1xf32>
      tpu.vector_store %arg6[%c0_19, %c0_20, %c0_21], %17 {strides = array<i32>} : memref<2x64x1xf32, #tpu.memory_space<vmem>>, vector<2x64x1xf32>,
      %cst_22 = arith.constant 0xFF800000 : f32
      %19 = vector.broadcast %cst_22 : f32 to vector<2x64x1xf32>
      %c0_23 = arith.constant 0 : index
      %c0_24 = arith.constant 0 : index
      %c0_25 = arith.constant 0 : index
      %20 = vector.load %arg7[%c0_23, %c0_24, %c0_25] : memref<2x64x1xf32, #tpu.memory_space<vmem>>, vector<2x64x1xf32>
      tpu.vector_store %arg7[%c0_23, %c0_24, %c0_25], %19 {strides = array<i32>} : memref<2x64x1xf32, #tpu.memory_space<vmem>>, vector<2x64x1xf32>,
    } else {
    }
    %c0 = arith.constant 0 : index
    %c0_1 = arith.constant 0 : index
    %c0_2 = arith.constant 0 : index
    %3 = vector.load %arg2[%c0, %c0_1, %c0_2] : memref<2x64x256xf32, #tpu.memory_space<vmem>>, vector<2x64x256xf32>
    %c0_3 = arith.constant 0 : index
    %c0_4 = arith.constant 0 : index
    %c0_5 = arith.constant 0 : index
    %4 = vector.load %arg6[%c0_3, %c0_4, %c0_5] : memref<2x64x1xf32, #tpu.memory_space<vmem>>, vector<2x64x1xf32>
    %cst = arith.constant dense<0.000000e+00> : vector<2x64xf32>
    %5 = vector.multi_reduction <add>, %3, %cst [2] : vector<2x64x256xf32> to vector<2x64xf32>
    %6 = vector.shape_cast %5 : vector<2x64xf32> to vector<2x64x1xf32>
    %7 = arith.addf %4, %6 : vector<2x64x1xf32>
    %c0_6 = arith.constant 0 : index
    %c0_7 = arith.constant 0 : index
    %c0_8 = arith.constant 0 : index
    %8 = vector.load %arg6[%c0_6, %c0_7, %c0_8] : memref<2x64x1xf32, #tpu.memory_space<vmem>>, vector<2x64x1xf32>
    tpu.vector_store %arg6[%c0_6, %c0_7, %c0_8], %7 {strides = array<i32>} : memref<2x64x1xf32, #tpu.memory_space<vmem>>, vector<2x64x1xf32>,
    %c0_9 = arith.constant 0 : index
    %c0_10 = arith.constant 0 : index
    %c0_11 = arith.constant 0 : index
    %9 = vector.load %arg7[%c0_9, %c0_10, %c0_11] : memref<2x64x1xf32, #tpu.memory_space<vmem>>, vector<2x64x1xf32>
    %cst_12 = arith.constant dense<0xFF800000> : vector<2x64xf32>
    %10 = vector.multi_reduction <maximumf>, %3, %cst_12 [2] : vector<2x64x256xf32> to vector<2x64xf32>
    %11 = vector.shape_cast %10 : vector<2x64xf32> to vector<2x64x1xf32>
    %12 = arith.maximumf %9, %11 : vector<2x64x1xf32>
    %c0_13 = arith.constant 0 : index
    %c0_14 = arith.constant 0 : index
    %c0_15 = arith.constant 0 : index
    %13 = vector.load %arg7[%c0_13, %c0_14, %c0_15] : memref<2x64x1xf32, #tpu.memory_space<vmem>>, vector<2x64x1xf32>
    tpu.vector_store %arg7[%c0_13, %c0_14, %c0_15], %12 {strides = array<i32>} : memref<2x64x1xf32, #tpu.memory_space<vmem>>, vector<2x64x1xf32>,
    %c0_i32_16 = arith.constant 0 : i32
    %14 = arith.cmpi eq, %arg1, %c0_i32_16 : i32
    %15 = arith.extui %14 : i1 to i32
    %c0_i32_17 = arith.constant 0 : i32
    %16 = arith.cmpi ne, %15, %c0_i32_17 : i32
    scf.if %16 {
      %c0_18 = arith.constant 0 : index
      %c0_19 = arith.constant 0 : index
      %17 = vector.load %arg3[%c0_18, %c0_19] : memref<4x64xf32, #tpu.memory_space<vmem>>, vector<4x64xf32>
      %c0_20 = arith.constant 0 : index
      %c0_21 = arith.constant 0 : index
      %18 = vector.load %arg4[%c0_20, %c0_21] : memref<64x4xf32, #tpu.memory_space<vmem>>, vector<64x4xf32>
      %c0_22 = arith.constant 0 : index
      %c0_23 = arith.constant 0 : index
      %c0_24 = arith.constant 0 : index
      %19 = vector.load %arg6[%c0_22, %c0_23, %c0_24] : memref<2x64x1xf32, #tpu.memory_space<vmem>>, vector<1x64x1xf32>
      %20 = vector.shape_cast %19 : vector<1x64x1xf32> to vector<64x1xf32>
      %cst_25 = arith.constant 3.906250e-03 : f32
      %21 = vector.broadcast %cst_25 : f32 to vector<64x1xf32>
      %22 = arith.mulf %20, %21 : vector<64x1xf32>
      %c0_26 = arith.constant 0 : index
      %c0_27 = arith.constant 0 : index
      %c0_28 = arith.constant 0 : index
      %23 = vector.load %arg7[%c0_26, %c0_27, %c0_28] : memref<2x64x1xf32, #tpu.memory_space<vmem>>, vector<1x64x1xf32>
      %24 = vector.shape_cast %23 : vector<1x64x1xf32> to vector<64x1xf32>
      %cst_29 = arith.constant dense<0.000000e+00> : vector<4x1xf32>
      %25 = tpu.matmul %17, %22, %cst_29 {dimension_numbers = #tpu.dot_dimension_numbers<[1], [0], [0], [1], [0, 0, 1, 1], [], []>, precision = #tpu.contract_precision<fp32>} : vector<4x64xf32>, vector<64x1xf32>, vector<4x1xf32> -> vector<4x1xf32>
      %cst_30 = arith.constant 0.000000e+00 : f32
      %26 = vector.broadcast %cst_30 : f32 to vector<4x1xf32>
      %27 = arith.maximumf %25, %26 : vector<4x1xf32>
      %cst_31 = arith.constant dense<0.000000e+00> : vector<4x1xf32>
      %28 = tpu.matmul %17, %24, %cst_31 {dimension_numbers = #tpu.dot_dimension_numbers<[1], [0], [0], [1], [0, 0, 1, 1], [], []>, precision = #tpu.contract_precision<fp32>} : vector<4x64xf32>, vector<64x1xf32>, vector<4x1xf32> -> vector<4x1xf32>
      %cst_32 = arith.constant 0.000000e+00 : f32
      %29 = vector.broadcast %cst_32 : f32 to vector<4x1xf32>
      %30 = arith.maximumf %28, %29 : vector<4x1xf32>
      %31 = arith.addf %27, %30 : vector<4x1xf32>
      %cst_33 = arith.constant dense<0.000000e+00> : vector<64x1xf32>
      %32 = tpu.matmul %18, %31, %cst_33 {dimension_numbers = #tpu.dot_dimension_numbers<[1], [0], [0], [1], [0, 0, 1, 1], [], []>, precision = #tpu.contract_precision<fp32>} : vector<64x4xf32>, vector<4x1xf32>, vector<64x1xf32> -> vector<64x1xf32>
      %cst_34 = arith.constant 0.000000e+00 : f32
      %33 = vector.broadcast %cst_34 : f32 to vector<64x1xf32>
      %34 = arith.subf %33, %32 : vector<64x1xf32>
      %35 = math.exp %34 : vector<64x1xf32>
      %cst_35 = arith.constant 1.000000e+00 : f32
      %36 = vector.broadcast %cst_35 : f32 to vector<64x1xf32>
      %37 = arith.addf %36, %35 : vector<64x1xf32>
      %cst_36 = arith.constant 1.000000e+00 : f32
      %38 = vector.broadcast %cst_36 : f32 to vector<64x1xf32>
      %39 = arith.divf %38, %37 : vector<64x1xf32>
      %c0_37 = arith.constant 0 : index
      %c0_38 = arith.constant 0 : index
      %c0_39 = arith.constant 0 : index
      %40 = vector.load %arg5[%c0_37, %c0_38, %c0_39] : memref<2x64x1xf32, #tpu.memory_space<vmem>>, vector<1x64x1xf32>
      %41 = vector.shape_cast %40 : vector<1x64x1xf32> to vector<64x1xf32>
      %42 = vector.shape_cast %39 : vector<64x1xf32> to vector<1x64x1xf32>
      tpu.vector_store %arg5[%c0_37, %c0_38, %c0_39], %42 {strides = array<i32>} : memref<2x64x1xf32, #tpu.memory_space<vmem>>, vector<1x64x1xf32>,
      %c1 = arith.constant 1 : index
      %c0_40 = arith.constant 0 : index
      %c0_41 = arith.constant 0 : index
      %43 = vector.load %arg6[%c1, %c0_40, %c0_41] : memref<2x64x1xf32, #tpu.memory_space<vmem>>, vector<1x64x1xf32>
      %44 = vector.shape_cast %43 : vector<1x64x1xf32> to vector<64x1xf32>
      %cst_42 = arith.constant 3.906250e-03 : f32
      %45 = vector.broadcast %cst_42 : f32 to vector<64x1xf32>
      %46 = arith.mulf %44, %45 : vector<64x1xf32>
      %c1_43 = arith.constant 1 : index
      %c0_44 = arith.constant 0 : index
      %c0_45 = arith.constant 0 : index
      %47 = vector.load %arg7[%c1_43, %c0_44, %c0_45] : memref<2x64x1xf32, #tpu.memory_space<vmem>>, vector<1x64x1xf32>
      %48 = vector.shape_cast %47 : vector<1x64x1xf32> to vector<64x1xf32>
      %cst_46 = arith.constant dense<0.000000e+00> : vector<4x1xf32>
      %49 = tpu.matmul %17, %46, %cst_46 {dimension_numbers = #tpu.dot_dimension_numbers<[1], [0], [0], [1], [0, 0, 1, 1], [], []>, precision = #tpu.contract_precision<fp32>} : vector<4x64xf32>, vector<64x1xf32>, vector<4x1xf32> -> vector<4x1xf32>
      %cst_47 = arith.constant 0.000000e+00 : f32
      %50 = vector.broadcast %cst_47 : f32 to vector<4x1xf32>
      %51 = arith.maximumf %49, %50 : vector<4x1xf32>
      %cst_48 = arith.constant dense<0.000000e+00> : vector<4x1xf32>
      %52 = tpu.matmul %17, %48, %cst_48 {dimension_numbers = #tpu.dot_dimension_numbers<[1], [0], [0], [1], [0, 0, 1, 1], [], []>, precision = #tpu.contract_precision<fp32>} : vector<4x64xf32>, vector<64x1xf32>, vector<4x1xf32> -> vector<4x1xf32>
      %cst_49 = arith.constant 0.000000e+00 : f32
      %53 = vector.broadcast %cst_49 : f32 to vector<4x1xf32>
      %54 = arith.maximumf %52, %53 : vector<4x1xf32>
      %55 = arith.addf %51, %54 : vector<4x1xf32>
      %cst_50 = arith.constant dense<0.000000e+00> : vector<64x1xf32>
      %56 = tpu.matmul %18, %55, %cst_50 {dimension_numbers = #tpu.dot_dimension_numbers<[1], [0], [0], [1], [0, 0, 1, 1], [], []>, precision = #tpu.contract_precision<fp32>} : vector<64x4xf32>, vector<4x1xf32>, vector<64x1xf32> -> vector<64x1xf32>
      %cst_51 = arith.constant 0.000000e+00 : f32
      %57 = vector.broadcast %cst_51 : f32 to vector<64x1xf32>
      %58 = arith.subf %57, %56 : vector<64x1xf32>
      %59 = math.exp %58 : vector<64x1xf32>
      %cst_52 = arith.constant 1.000000e+00 : f32
      %60 = vector.broadcast %cst_52 : f32 to vector<64x1xf32>
      %61 = arith.addf %60, %59 : vector<64x1xf32>
      %cst_53 = arith.constant 1.000000e+00 : f32
      %62 = vector.broadcast %cst_53 : f32 to vector<64x1xf32>
      %63 = arith.divf %62, %61 : vector<64x1xf32>
      %c1_54 = arith.constant 1 : index
      %c0_55 = arith.constant 0 : index
      %c0_56 = arith.constant 0 : index
      %64 = vector.load %arg5[%c1_54, %c0_55, %c0_56] : memref<2x64x1xf32, #tpu.memory_space<vmem>>, vector<1x64x1xf32>
      %65 = vector.shape_cast %64 : vector<1x64x1xf32> to vector<64x1xf32>
      %66 = vector.shape_cast %63 : vector<64x1xf32> to vector<1x64x1xf32>
      tpu.vector_store %arg5[%c1_54, %c0_55, %c0_56], %66 {strides = array<i32>} : memref<2x64x1xf32, #tpu.memory_space<vmem>>, vector<1x64x1xf32>,
    } else {
    }
    return
  }
  func.func @transform_0(%arg0: i32, %arg1: i32) -> (i32, i32, i32) {
    %c0_i32 = arith.constant 0 : i32
    %c0_i32_0 = arith.constant 0 : i32
    return %arg0, %c0_i32, %arg1 : i32, i32, i32
  }
  func.func @transform_1(%arg0: i32, %arg1: i32) -> (i32, i32) {
    %c0_i32 = arith.constant 0 : i32
    %c0_i32_0 = arith.constant 0 : i32
    %c0_i32_1 = arith.constant 0 : i32
    return %c0_i32, %c0_i32_0 : i32, i32
  }
  func.func @transform_2(%arg0: i32, %arg1: i32) -> (i32, i32) {
    %c0_i32 = arith.constant 0 : i32
    %c0_i32_0 = arith.constant 0 : i32
    %c0_i32_1 = arith.constant 0 : i32
    return %c0_i32, %c0_i32_0 : i32, i32
  }
  func.func @transform_3(%arg0: i32, %arg1: i32) -> (i32, i32, i32) {
    %c0_i32 = arith.constant 0 : i32
    %c0_i32_0 = arith.constant 0 : i32
    %c0_i32_1 = arith.constant 0 : i32
    return %arg0, %c0_i32, %c0_i32_0 : i32, i32, i32
  }
}

</mosaic_0001>

<bundles_post_ra>
// kernel: tpu_custom_call.1
= control target key start
LH: loop header
LB: loop body
LE: loop exit
PB: predicated region body
PF: predicated region fallthrough
CT: control target
= control target key end

     0   :  { %8 = vsyncpa [#allocation5], 0  ;;  %s5615_s12 = smov [#allocation4]   ;;  %s6598_s0 = inlined_call_operand.hbm [shape: f32[2,64,256], index: 0, kind: input, shape index: {}]   ;;  %s6599_s1 = inlined_call_operand.vmem [shape: f32[4,64], index: 1, kind: input, shape index: {}]   ;;  %s6600_s2 = inlined_call_operand.vmem [shape: f32[64,4], index: 2, kind: input, shape index: {}]   ;;  %s6601_s3 = inlined_call_operand.vmem [shape: f32[2,64,1], index: 3, kind: output, shape index: {}]  }
   0x1   :  { %s14_s13 = sshll.u32 %s5615_s12, 4  ;;  %s5591_s16 = scalar_lea.hbm %s6598_s0, 4096  ;;  %s15_s13 = int_to_ptr.vmem [resolvable:$true] %s14_s13 }
   0x2   :  { %p5592_p0 = scmp.ne.s32.totalorder %s6598_s0, %s5591_s16  ;;  %p5595_p1 = scmp.lt.u32.totalorder %s5591_s16, %s6598_s0 }
   0x4   :  { %p5597_p2 = pnand %p5595_p1, %p5592_p0 }
   0x6   :  { %5600 = shalt.err (!%p5597_p2)
}
   0x7   :  { %s5601_s21 = scalar_lea.vmem %s15_s13, 4096  ;;  %p5606_p4 = scmp.lt.s32.totalorder %s15_s13, %s15_s13 }
   0x8   :  { %p5602_p3 = scmp.ne.s32.totalorder %s15_s13, %s5601_s21  ;;  %p5607_p5 = scmp.lt.s32.totalorder %s5601_s21, %s5601_s21 }
   0xa   :  { %p5608_p6 = por %p5607_p5, %p5606_p4 }
   0xc   :  { %p5609_p7 = pnand %p5608_p6, %p5602_p3 }
   0xe   :  { %5612 = shalt.err (!%p5609_p7)
}
   0xf   :  { %s5616_s22 = smov 256   ;;  %s5617_s23 = smov 16  }
  0x10   :  { %20 = dma.hbm_to_vmem [thread:$0]  %s6598_s0, 4096, %s15_s13, [#allocation5], %s5616_s22, %s5616_s22, %s5617_s23  }
  0x11   :  { %5613 = dma.done.wait [#allocation5], 4096  }
  0x12   :  { %5614 = vsyncadd [#allocation5], 4294963200  ;;  %vm32_vm0 = vcmask 7168   ;;  %v5618_v0 = vmov -inf   ;;  %v65_v1 = vld [vmem:[#allocation4] sm:$0xff]  ;;  %v66_v2 = vld [vmem:[#allocation4 + $0x8] sm:$0xff] }
  0x13   :  { %49 = vst.msk [vmem:[#allocation3] sm:$0xff] %vm32_vm0, %v5618_v0  ;;  %50 = vst.msk [vmem:[#allocation3 + $0x8] sm:$0xff] %vm32_vm0, %v5618_v0  ;;  %v67_v3 = vld [vmem:[#allocation4 + $0x10] sm:$0xff]  ;;  %v210_v4 = vmax.f32 %v65_v1, %v66_v2  ;;  %v113_v5 = vadd.f32 %v66_v2, %v65_v1  ;;  %v68_v6 = vld [vmem:[#allocation4 + $0x18] sm:$0xff]  ;;  %v5619_v15 = vmov 0.0   ;;  %v5620_v34 = vmov 0.0|0.0  }
  0x14   :  { %51 = vst.msk [vmem:[#allocation3 + $0x10] sm:$0xff] %vm32_vm0, %v5618_v0  ;;  %52 = vst.msk [vmem:[#allocation3 + $0x18] sm:$0xff] %vm32_vm0, %v5618_v0  ;;  %v213_v7 = vmax.f32 %v67_v3, %v68_v6  ;;  %v116_v8 = vadd.f32 %v68_v6, %v67_v3  ;;  %v71_v9 = vld [vmem:[#allocation4 + $0x30] sm:$0xff]  ;;  %v72_v10 = vld [vmem:[#allocation4 + $0x38] sm:$0xff]  ;;  %5182 = vmatprep.subr.bf16.mxu1 %v5620_v34  ;;  %5110 = vmatprep.subr.bf16.mxu0 %v5620_v34  ;;  %vm5621_vm1 = vmmov 0   ;;  %vm326_vm2 = vcmask 523264  }
  0x15   :  { %53 = vst.msk [vmem:[#allocation3 + $0x20] sm:$0xff] %vm32_vm0, %v5618_v0  ;;  %54 = vst.msk [vmem:[#allocation3 + $0x28] sm:$0xff] %vm32_vm0, %v5618_v0  ;;  %211 = vmax.xlane.f32.xlu1 %v210_v4  ;;  %114 = vadd.xlane.f32.xlu0 %v113_v5  ;;  %v69_v11 = vld [vmem:[#allocation4 + $0x20] sm:$0xff]  ;;  %v70_v12 = vld [vmem:[#allocation4 + $0x28] sm:$0xff]  ;;  %v122_v13 = vadd.f32 %v72_v10, %v71_v9  ;;  %v219_v16 = vmax.f32 %v71_v9, %v72_v10  ;;  %vm1407_vm3 = vcmask 31744   ;;  %vm1432_vm4 = vcmask 1043456  }
  0x16   :  { %55 = vst.msk [vmem:[#allocation3 + $0x30] sm:$0xff] %vm32_vm0, %v5618_v0  ;;  %56 = vst.msk [vmem:[#allocation3 + $0x38] sm:$0xff] %vm32_vm0, %v5618_v0  ;;  %v119_v14 = vadd.f32 %v70_v12, %v69_v11  ;;  %v216_v17 = vmax.f32 %v69_v11, %v70_v12  ;;  %v75_v18 = vld [vmem:[#allocation4 + $0x50] sm:$0xff]  ;;  %v76_v19 = vld [vmem:[#allocation4 + $0x58] sm:$0xff]  ;;  %4502 = vmatprep.mubr.msk.f32.mxu0 %vm5621_vm1, %v5619_v15  ;;  %4616 = vmatprep.mubr.msk.f32.mxu1 %vm5621_vm1, %v5619_v15 }
  0x17   :  { %57 = vst.msk [vmem:[#allocation3 + $0x40] sm:$0xff] %vm32_vm0, %v5618_v0  ;;  %58 = vst.msk [vmem:[#allocation3 + $0x48] sm:$0xff] %vm32_vm0, %v5618_v0  ;;  %v73_v20 = vld [vmem:[#allocation4 + $0x40] sm:$0xff]  ;;  %v74_v21 = vld [vmem:[#allocation4 + $0x48] sm:$0xff]  ;;  %v128_v22 = vadd.f32 %v76_v19, %v75_v18  ;;  %v225_v24 = vmax.f32 %v75_v18, %v76_v19 }
  0x18   :  { %59 = vst.msk [vmem:[#allocation3 + $0x50] sm:$0xff] %vm32_vm0, %v5618_v0  ;;  %60 = vst.msk [vmem:[#allocation3 + $0x58] sm:$0xff] %vm32_vm0, %v5618_v0  ;;  %v125_v23 = vadd.f32 %v74_v21, %v73_v20  ;;  %v222_v25 = vmax.f32 %v73_v20, %v74_v21  ;;  %v79_v26 = vld [vmem:[#allocation4 + $0x70] sm:$0xff]  ;;  %v80_v27 = vld [vmem:[#allocation4 + $0x78] sm:$0xff] }
  0x19   :  { %61 = vst.msk [vmem:[#allocation3 + $0x60] sm:$0xff] %vm32_vm0, %v5618_v0  ;;  %62 = vst.msk [vmem:[#allocation3 + $0x68] sm:$0xff] %vm32_vm0, %v5618_v0  ;;  %214 = vmax.xlane.f32.xlu1 %v213_v7  ;;  %117 = vadd.xlane.f32.xlu0 %v116_v8  ;;  %v77_v28 = vld [vmem:[#allocation4 + $0x60] sm:$0xff]  ;;  %v78_v29 = vld [vmem:[#allocation4 + $0x68] sm:$0xff]  ;;  %v134_v30 = vadd.f32 %v80_v27, %v79_v26  ;;  %v231_v32 = vmax.f32 %v79_v26, %v80_v27 }
  0x1a   :  { %63 = vst.msk [vmem:[#allocation3 + $0x70] sm:$0xff] %vm32_vm0, %v5618_v0  ;;  %64 = vst.msk [vmem:[#allocation3 + $0x78] sm:$0xff] %vm32_vm0, %v5618_v0  ;;  %v131_v31 = vadd.f32 %v78_v29, %v77_v28  ;;  %v228_v33 = vmax.f32 %v77_v28, %v78_v29  ;;  %v194_v35 = vld [vmem:[#allocation3] sm:$0xff]  ;;  %v83_v37 = vld [vmem:[#allocation4 + $0x90] sm:$0xff] }
  0x1b   :  { %33 = vst.msk [vmem:[#allocation2] sm:$0xff] %vm32_vm0, %v5619_v15  ;;  %34 = vst.msk [vmem:[#allocation2 + $0x8] sm:$0xff] %vm32_vm0, %v5619_v15  ;;  %v84_v38 = vld [vmem:[#allocation4 + $0x98] sm:$0xff]  ;;  %v81_v39 = vld [vmem:[#allocation4 + $0x80] sm:$0xff] }
  0x1c   :  { %35 = vst.msk [vmem:[#allocation2 + $0x10] sm:$0xff] %vm32_vm0, %v5619_v15  ;;  %36 = vst.msk [vmem:[#allocation2 + $0x18] sm:$0xff] %vm32_vm0, %v5619_v15  ;;  %v140_v42 = vadd.f32 %v84_v38, %v83_v37  ;;  %v82_v43 = vld [vmem:[#allocation4 + $0x88] sm:$0xff]  ;;  %v237_v49 = vmax.f32 %v83_v37, %v84_v38  ;;  %v87_v51 = vld [vmem:[#allocation4 + $0xb0] sm:$0xff] }
  0x1d   :  { %37 = vst.msk [vmem:[#allocation2 + $0x20] sm:$0xff] %vm32_vm0, %v5619_v15  ;;  %38 = vst.msk [vmem:[#allocation2 + $0x28] sm:$0xff] %vm32_vm0, %v5619_v15  ;;  %123 = vadd.xlane.f32.xlu1 %v122_v13  ;;  %120 = vadd.xlane.f32.xlu0 %v119_v14  ;;  %v137_v46 = vadd.f32 %v82_v43, %v81_v39  ;;  %v195_v47 = vld [vmem:[#allocation3 + $0x8] sm:$0xff]  ;;  %v234_v50 = vmax.f32 %v81_v39, %v82_v43  ;;  %v88_v52 = vld [vmem:[#allocation4 + $0xb8] sm:$0xff] }
  0x1e   :  { %39 = vst.msk [vmem:[#allocation2 + $0x30] sm:$0xff] %vm32_vm0, %v5619_v15  ;;  %40 = vst.msk [vmem:[#allocation2 + $0x38] sm:$0xff] %vm32_vm0, %v5619_v15  ;;  %v85_v55 = vld [vmem:[#allocation4 + $0xa0] sm:$0xff]  ;;  %v86_v56 = vld [vmem:[#allocation4 + $0xa8] sm:$0xff]  ;;  %v146_v61 = vadd.f32 %v88_v52, %v87_v51  ;;  %v243_v6 = vmax.f32 %v87_v51, %v88_v52 }
  0x1f   :  { %41 = vst.msk [vmem:[#allocation2 + $0x40] sm:$0xff] %vm32_vm0, %v5619_v15  ;;  %42 = vst.msk [vmem:[#allocation2 + $0x48] sm:$0xff] %vm32_vm0, %v5619_v15  ;;  %v143_v62 = vadd.f32 %v86_v56, %v85_v55  ;;  %v197_v3 = vld [vmem:[#allocation3 + $0x18] sm:$0xff]  ;;  %v196_v4 = vld [vmem:[#allocation3 + $0x10] sm:$0xff]  ;;  %v240_v8 = vmax.f32 %v85_v55, %v86_v56 }
  0x20   :  { %43 = vst.msk [vmem:[#allocation2 + $0x50] sm:$0xff] %vm32_vm0, %v5619_v15  ;;  %44 = vst.msk [vmem:[#allocation2 + $0x58] sm:$0xff] %vm32_vm0, %v5619_v15  ;;  %v293_v5 = vld [vmem:[%s6599_s1] sm:$0xf]  ;;  %v5717_v9 = vld [vmem:[#allocation4 + $0xd0] sm:$0xff] }
  0x21   :  { %45 = vst.msk [vmem:[#allocation2 + $0x60] sm:$0xff] %vm32_vm0, %v5619_v15  ;;  %46 = vst.msk [vmem:[#allocation2 + $0x68] sm:$0xff] %vm32_vm0, %v5619_v15  ;;  %220 = vmax.xlane.f32.xlu1 %v219_v16  ;;  %217 = vmax.xlane.f32.xlu0 %v216_v17  ;;  %v5719_v10 = vld [vmem:[#allocation4 + $0xd8] sm:$0xff]  ;;  %v5721_v14 = vld [vmem:[#allocation4 + $0xc0] sm:$0xff]  ;;  %v328_v20 = vsel %vm326_vm2, %v293_v5, 0 }
  0x22   :  { %47 = vst.msk [vmem:[#allocation2 + $0x70] sm:$0xff] %vm32_vm0, %v5619_v15  ;;  %48 = vst.msk [vmem:[#allocation2 + $0x78] sm:$0xff] %vm32_vm0, %v5619_v15  ;;  %v97_v36 = vld [vmem:[#allocation2] sm:$0xff]  ;;  %v98_v48 = vld [vmem:[#allocation2 + $0x8] sm:$0xff]  ;;  %v249_v43 = vmax.f32 %v5717_v9, %v5719_v10 }
  0x23   :  { %v100_v59 = vld [vmem:[#allocation2 + $0x18] sm:$0xff]  ;;  %v99_v60 = vld [vmem:[#allocation2 + $0x10] sm:$0xff]  ;;  %v5723_v16 = vld [vmem:[#allocation4 + $0xc8] sm:$0xff] }
  0x24   :  { %v102_v19 = vld [vmem:[#allocation2 + $0x28] sm:$0xff]  ;;  %v101_v21 = vld [vmem:[#allocation2 + $0x20] sm:$0xff]  ;;  %v149_v29 = vadd.f32 %v5723_v16, %v5721_v14 }
  0x25   :  { %129 = vadd.xlane.f32.xlu1 %v128_v22  ;;  %126 = vadd.xlane.f32.xlu0 %v125_v23  ;;  %v199_v37 = vld [vmem:[#allocation3 + $0x28] sm:$0xff]  ;;  %v198_v38 = vld [vmem:[#allocation3 + $0x20] sm:$0xff] }
  0x29   :  { %226 = vmax.xlane.f32.xlu1 %v225_v24  ;;  %223 = vmax.xlane.f32.xlu0 %v222_v25  ;;  %v152_v25 = vadd.f32 %v5719_v10, %v5717_v9 }
  0x2d   :  { %135 = vadd.xlane.f32.xlu1 %v134_v30  ;;  %132 = vadd.xlane.f32.xlu0 %v131_v31 }
  0x31   :  { %232 = vmax.xlane.f32.xlu1 %v231_v32  ;;  %229 = vmax.xlane.f32.xlu0 %v228_v33  ;;  %v5737_v32 = vand.u32 4294901760, %v328_v20 }
  0x33   :  { %v5759_v52 = vsub.f32 %v328_v20, %v5737_v32 }
  0x35   :  { %141 = vadd.xlane.f32.xlu1 %v140_v42  ;;  %138 = vadd.xlane.f32.xlu0 %v137_v46  ;;  %v246_v46 = vmax.f32 %v5721_v14, %v5723_v16  ;;  %v200_v16 = vld [vmem:[#allocation3 + $0x30] sm:$0xff] }
  0x39   :  { %238 = vmax.xlane.f32.xlu1 %v237_v49  ;;  %235 = vmax.xlane.f32.xlu0 %v234_v50 }
  0x3d   :  { %147 = vadd.xlane.f32.xlu1 %v146_v61  ;;  %144 = vadd.xlane.f32.xlu0 %v143_v62  ;;  %v103_v61 = vld [vmem:[#allocation2 + $0x30] sm:$0xff] }
  0x41   :  { %244 = vmax.xlane.f32.xlu1 %v243_v6  ;;  %241 = vmax.xlane.f32.xlu0 %v240_v8  ;;  %v5780_v8 = vand.u32 4294901760, %v5759_v52 }
  0x45   :  { %153 = vadd.xlane.f32.xlu1 %v152_v25  ;;  %150 = vadd.xlane.f32.xlu0 %v149_v29 }
  0x49   :  { %250 = vmax.xlane.f32.xlu1 %v249_v43  ;;  %247 = vmax.xlane.f32.xlu0 %v246_v46 }
  0xa2   :  { %v212_v40 = vpop.xlane.xlu1 %211  ;;  %v115_v41 = vpop.xlane.xlu0 %114 }
  0xa3   :  { %v258_v44 = vmax.f32 %v194_v35, %v212_v40  ;;  %v161_v45 = vadd.f32 %v115_v41, %v97_v36 }
  0xa5   :  { %274 = vst.msk [vmem:[#allocation3] sm:$0xff] %vm32_vm0, %v258_v44  ;;  %178 = vst.msk [vmem:[#allocation2] sm:$0xff] %vm32_vm0, %v161_v45 }
  0xa6   :  { %v215_v53 = vpop.xlane.xlu1 %214  ;;  %v118_v54 = vpop.xlane.xlu0 %117 }
  0xa7   :  { %v259_v57 = vmax.f32 %v195_v47, %v215_v53  ;;  %v162_v58 = vadd.f32 %v118_v54, %v98_v48  ;;  %v5751_v47 = vld [vmem:[#allocation4 + $0xf0] sm:$0xff]  ;;  %v5753_v48 = vld [vmem:[#allocation4 + $0xf8] sm:$0xff]  ;;  %v5761_v53 = vld [vmem:[#allocation4 + $0xe0] sm:$0xff] }
  0xa8   :  { %v5763_v54 = vld [vmem:[#allocation4 + $0xe8] sm:$0xff] }
  0xa9   :  { %275 = vst.msk [vmem:[#allocation3 + $0x8] sm:$0xff] %vm32_vm0, %v259_v57  ;;  %179 = vst.msk [vmem:[#allocation2 + $0x8] sm:$0xff] %vm32_vm0, %v162_v58  ;;  %v104_v57 = vld [vmem:[#allocation2 + $0x38] sm:$0xff]  ;;  %v252_v20 = vmax.f32 %v5761_v53, %v5763_v54 }
  0xaa   :  { %v124_v63 = vpop.xlane.xlu1 %123  ;;  %v121_v0 = vpop.xlane.xlu0 %120 }
  0xab   :  { %v164_v1 = vadd.f32 %v124_v63, %v100_v59  ;;  %v163_v2 = vadd.f32 %v121_v0, %v99_v60  ;;  %v158_v0 = vadd.f32 %v5753_v48, %v5751_v47 }
  0xac   :  { %v302_v7 = vld [vmem:[#allocation2] sm:$0xff] }
  0xad   :  { %181 = vst.msk [vmem:[#allocation2 + $0x18] sm:$0xff] %vm32_vm0, %v164_v1  ;;  %180 = vst.msk [vmem:[#allocation2 + $0x10] sm:$0xff] %vm32_vm0, %v163_v2  ;;  %v318_v13 = vld [vmem:[#allocation3] sm:$0xff]  ;;  %v5728_v24 = vmul.f32 0.00390625, %v302_v7  ;;  %159 = vadd.xlane.f32.xlu1 %v158_v0 }
  0xae   :  { %v221_v11 = vpop.xlane.xlu1 %220  ;;  %v218_v12 = vpop.xlane.xlu0 %217  ;;  %v869_v26 = vand.u32 4294901760, %v318_v13 }
  0xaf   :  { %v261_v17 = vmax.f32 %v197_v3, %v221_v11  ;;  %v260_v18 = vmax.f32 %v196_v4, %v218_v12  ;;  %v331_v39 = vand.u32 4294901760, %v5728_v24  ;;  %v155_v4 = vadd.f32 %v5763_v54, %v5761_v53  ;;  %v201_v11 = vld [vmem:[#allocation3 + $0x38] sm:$0xff] }
  0xb0   :  { %v5726_v22 = vld [vmem:[#allocation3 + $0x8] sm:$0xff]  ;;  %v5765_v60 = vsub.f32 %v318_v13, %v869_v26  ;;  %v255_v12 = vmax.f32 %v5751_v47, %v5753_v48 }
  0xb1   :  { %v303_v23 = vld [vmem:[#allocation2 + $0x8] sm:$0xff]  ;;  %277 = vst.msk [vmem:[#allocation3 + $0x18] sm:$0xff] %vm32_vm0, %v261_v17  ;;  %276 = vst.msk [vmem:[#allocation3 + $0x10] sm:$0xff] %vm32_vm0, %v260_v18  ;;  %v872_v27 = vand.u32 4294901760, %v5726_v22  ;;  %v5785_v13 = vsub.f32 %v5728_v24, %v331_v39  ;;  %156 = vadd.xlane.f32.xlu0 %v155_v4 }
  0xb2   :  { %v311_v28 = vmul.f32 0.00390625, %v303_v23  ;;  %v130_v30 = vpop.xlane.xlu1 %129  ;;  %v127_v31 = vpop.xlane.xlu0 %126  ;;  %256 = vmax.xlane.f32.xlu1 %v255_v12 }
  0xb3   :  { %v166_v33 = vadd.f32 %v130_v30, %v102_v19  ;;  %v165_v35 = vadd.f32 %v127_v31, %v101_v21  ;;  %v5741_v36 = vpack.c.bf16 %v872_v27, %v869_v26  ;;  %v954_v19 = vand.u32 4294901760, %v5765_v60 }
  0xb4   :  { %v334_v40 = vand.u32 4294901760, %v311_v28  ;;  %v304_v41 = vld [vmem:[#allocation2 + $0x10] sm:$0xff]  ;;  %v305_v42 = vld [vmem:[#allocation2 + $0x18] sm:$0xff]  ;;  %v5796_v21 = vsub.f32 %v5726_v22, %v872_v27  ;;  %v406_v27 = vsub.f32 %v5759_v52, %v5780_v8 }
  0xb5   :  { %183 = vst.msk [vmem:[#allocation2 + $0x28] sm:$0xff] %vm32_vm0, %v166_v33  ;;  %182 = vst.msk [vmem:[#allocation2 + $0x20] sm:$0xff] %vm32_vm0, %v165_v35  ;;  %5184 = vmatpush3.bf16.msra.mxu1 %v5741_v36  ;;  %v312_v44 = vmul.f32 0.00390625, %v304_v41  ;;  %v313_v45 = vmul.f32 0.00390625, %v305_v42  ;;  %253 = vmax.xlane.f32.xlu0 %v252_v20 }
  0xb6   :  { %v227_v49 = vpop.xlane.xlu1 %226  ;;  %v224_v50 = vpop.xlane.xlu0 %223  ;;  %v5755_v51 = vpack.c.bf16 %v334_v40, %v331_v39  ;;  %5185 = vmatprep.subr.bf16.mxu1 %v5620_v34  ;;  %v5772_v1 = vsub.f32 %v311_v28, %v334_v40  ;;  %v416_v39 = vand.u32 4294901760, %v5785_v13  ;;  %v5814_v40 = vsub.f32 %v5765_v60, %v954_v19 }
  0xb7   :  { %v263_v55 = vmax.f32 %v199_v37, %v227_v49  ;;  %v262_v56 = vmax.f32 %v198_v38, %v224_v50  ;;  %v337_v58 = vand.u32 4294901760, %v312_v44  ;;  %v340_v59 = vand.u32 4294901760, %v313_v45 }
  0xb8   :  { %5112 = vmatpush3.bf16.msra.mxu0 %v5755_v51  ;;  %v320_v62 = vld [vmem:[#allocation3 + $0x10] sm:$0xff]  ;;  %v321_v63 = vld [vmem:[#allocation3 + $0x18] sm:$0xff]  ;;  %v423_v25 = vand.u32 4294901760, %v5772_v1  ;;  %v5830_v49 = vand.u32 4294901760, %v406_v27 }
  0xb9   :  { %279 = vst.msk [vmem:[#allocation3 + $0x28] sm:$0xff] %vm32_vm0, %v263_v55  ;;  %278 = vst.msk [vmem:[#allocation3 + $0x20] sm:$0xff] %vm32_vm0, %v262_v56  ;;  %5113 = vmatprep.subr.bf16.mxu0 %v5620_v34  ;;  %v5775_v2 = vpack.c.bf16 %v340_v59, %v337_v58  ;;  %v875_v3 = vand.u32 4294901760, %v320_v62  ;;  %v878_v7 = vand.u32 4294901760, %v321_v63  ;;  %v5802_v26 = vsub.f32 %v312_v44, %v337_v58 }
  0xba   :  { %v136_v5 = vpop.xlane.xlu1 %135  ;;  %v133_v6 = vpop.xlane.xlu0 %132  ;;  %v5804_v28 = vsub.f32 %v313_v45, %v340_v59  ;;  %v424_v43 = vsub.f32 %v5772_v1, %v423_v25  ;;  %v961_v44 = vand.u32 4294901760, %v5796_v21  ;;  %v417_v58 = vsub.f32 %v5785_v13, %v416_v39 }
  0xbb   :  { %v168_v9 = vadd.f32 %v136_v5, %v104_v57  ;;  %v167_v10 = vadd.f32 %v133_v6, %v103_v61  ;;  %v5788_v14 = vpack.c.bf16 %v878_v7, %v875_v3  ;;  %v5824_v45 = vsub.f32 %v320_v62, %v875_v3 }
  0xbc   :  { %5115 = vmatpush3.bf16.msra.mxu0 %v5775_v2  ;;  %v306_v17 = vld [vmem:[#allocation2 + $0x20] sm:$0xff]  ;;  %v307_v18 = vld [vmem:[#allocation2 + $0x28] sm:$0xff]  ;;  %v5826_v46 = vsub.f32 %v321_v63, %v878_v7  ;;  %v430_v48 = vand.u32 4294901760, %v5802_v26  ;;  %v437_v50 = vand.u32 4294901760, %v5804_v28  ;;  %v956_v62 = vand.u32 4294901760, %v5814_v40 }
  0xbd   :  { %185 = vst.msk [vmem:[#allocation2 + $0x38] sm:$0xff] %vm32_vm0, %v168_v9  ;;  %184 = vst.msk [vmem:[#allocation2 + $0x30] sm:$0xff] %vm32_vm0, %v167_v10  ;;  %5116 = vmatprep.subr.bf16.mxu0 %v5620_v34  ;;  %v314_v23 = vmul.f32 0.00390625, %v306_v17  ;;  %v315_v24 = vmul.f32 0.00390625, %v307_v18  ;;  %5187 = vmatpush3.bf16.msra.mxu1 %v5788_v14  ;;  %v962_v63 = vsub.f32 %v5796_v21, %v961_v44  ;;  %v425_v0 = vand.u32 4294901760, %v424_v43 }
  0xbe   :  { %v233_v29 = vpop.xlane.xlu1 %232  ;;  %v230_v22 = vpop.xlane.xlu0 %229  ;;  %5188 = vmatprep.subr.bf16.mxu1 %v5620_v34  ;;  %v431_v3 = vsub.f32 %v5802_v26, %v430_v48  ;;  %v968_v4 = vand.u32 4294901760, %v5824_v45  ;;  %v975_v5 = vand.u32 4294901760, %v5826_v46  ;;  %v438_v10 = vsub.f32 %v5804_v28, %v437_v50 }
  0xbf   :  { %v265_v30 = vmax.f32 %v201_v11, %v233_v29  ;;  %v264_v31 = vmax.f32 %v200_v16, %v230_v22  ;;  %v343_v33 = vand.u32 4294901760, %v314_v23  ;;  %v346_v35 = vand.u32 4294901760, %v315_v24 }
  0xc0   :  { %v322_v37 = vld [vmem:[#allocation3 + $0x20] sm:$0xff]  ;;  %v323_v38 = vld [vmem:[#allocation3 + $0x28] sm:$0xff]  ;;  %v418_v17 = vand.u32 4294901760, %v417_v58 }
  0xc1   :  { %281 = vst.msk [vmem:[#allocation3 + $0x38] sm:$0xff] %vm32_vm0, %v265_v30  ;;  %280 = vst.msk [vmem:[#allocation3 + $0x30] sm:$0xff] %vm32_vm0, %v264_v31  ;;  %v5818_v41 = vpack.c.bf16 %v346_v35, %v343_v33  ;;  %v881_v42 = vand.u32 4294901760, %v322_v37  ;;  %v884_v47 = vand.u32 4294901760, %v323_v38  ;;  %v5833_v53 = vsub.f32 %v314_v23, %v343_v33 }
  0xc2   :  { %v5835_v54 = vsub.f32 %v315_v24, %v346_v35  ;;  %v5123_v30 = vpack.c.bf16 %v425_v0, %v418_v17  ;;  %v963_v31 = vand.u32 4294901760, %v962_v63  ;;  %v432_v33 = vand.u32 4294901760, %v431_v3 }
  0xc3   :  { %5118 = vmatpush3.bf16.msra.mxu0 %v5818_v41  ;;  %v5837_v55 = vpack.c.bf16 %v884_v47, %v881_v42  ;;  %v5853_v6 = vsub.f32 %v322_v37, %v881_v42  ;;  %v5859_v11 = vsub.f32 %v323_v38, %v884_v47  ;;  %v444_v18 = vand.u32 4294901760, %v5833_v53 }
  0xc4   :  { %5119 = vmatprep.subr.bf16.mxu0 %v5620_v34  ;;  %v308_v56 = vld [vmem:[#allocation2 + $0x30] sm:$0xff]  ;;  %v309_v57 = vld [vmem:[#allocation2 + $0x38] sm:$0xff]  ;;  %v451_v20 = vand.u32 4294901760, %v5835_v54  ;;  %v439_v35 = vand.u32 4294901760, %v438_v10  ;;  %v969_v37 = vsub.f32 %v5824_v45, %v968_v4  ;;  %v976_v38 = vsub.f32 %v5826_v46, %v975_v5 }
  0xc5   :  { %v316_v59 = vmul.f32 0.00390625, %v308_v56  ;;  %v317_v61 = vmul.f32 0.00390625, %v309_v57  ;;  %5190 = vmatpush3.bf16.msra.mxu1 %v5837_v55  ;;  %v982_v40 = vand.u32 4294901760, %v5853_v6  ;;  %v989_v56 = vand.u32 4294901760, %v5859_v11 }
  0xc6   :  { %5191 = vmatprep.subr.bf16.mxu1 %v5620_v34  ;;  %v445_v57 = vsub.f32 %v5833_v53, %v444_v18  ;;  %v452_v58 = vsub.f32 %v5835_v54, %v451_v20  ;;  %v5195_v63 = vpack.c.bf16 %v963_v31, %v956_v62  ;;  %v5126_v0 = vpack.c.bf16 %v439_v35, %v432_v33 }
  0xc7   :  { %v349_v7 = vand.u32 4294901760, %v316_v59  ;;  %v352_v9 = vand.u32 4294901760, %v317_v61  ;;  %v970_v3 = vand.u32 4294901760, %v969_v37  ;;  %v990_v10 = vsub.f32 %v5859_v11, %v989_v56 }
  0xc8   :  { %v324_v12 = vld [vmem:[#allocation3 + $0x30] sm:$0xff]  ;;  %v325_v16 = vld [vmem:[#allocation3 + $0x38] sm:$0xff]  ;;  %v446_v62 = vand.u32 4294901760, %v445_v57  ;;  %v453_v17 = vand.u32 4294901760, %v452_v58 }
  0xc9   :  { %v5863_v23 = vpack.c.bf16 %v352_v9, %v349_v7  ;;  %v5865_v24 = vsub.f32 %v316_v59, %v349_v7  ;;  %v5867_v29 = vsub.f32 %v317_v61, %v352_v9  ;;  %v887_v22 = vand.u32 4294901760, %v324_v12 }
  0xca   :  { %v890_v27 = vand.u32 4294901760, %v325_v16  ;;  %v977_v7 = vand.u32 4294901760, %v976_v38  ;;  %v983_v9 = vsub.f32 %v5853_v6, %v982_v40  ;;  %v991_v33 = vand.u32 4294901760, %v990_v10 }
  0xcb   :  { %5121 = vmatpush3.bf16.msra.mxu0 %v5863_v23  ;;  %v5879_v43 = vsub.f32 %v324_v12, %v887_v22  ;;  %v458_v59 = vand.u32 4294901760, %v5865_v24  ;;  %v465_v61 = vand.u32 4294901760, %v5867_v29  ;;  %v5129_v38 = vpack.c.bf16 %v453_v17, %v446_v62 }
  0xcc   :  { %v5877_v42 = vpack.c.bf16 %v890_v27, %v887_v22  ;;  %v5881_v47 = vsub.f32 %v325_v16, %v890_v27  ;;  %5122 = vmatprep.subr.bf16.mxu0 %v5620_v34  ;;  %v984_v31 = vand.u32 4294901760, %v983_v9  ;;  %v5135_v10 = vpack.c.bf16 %v5772_v1, %v5785_v13 }
  0xcd   :  { %v996_v12 = vand.u32 4294901760, %v5879_v43  ;;  %v459_v22 = vsub.f32 %v5865_v24, %v458_v59  ;;  %v466_v27 = vsub.f32 %v5867_v29, %v465_v61  ;;  %v5207_v62 = vpack.c.bf16 %v5796_v21, %v5765_v60 }
  0xce   :  { %5193 = vmatpush3.bf16.msra.mxu1 %v5877_v42  ;;  %4503 = vmatmul.mubr.f32.vlgmr.msra.gmra.mrb[0].mxu0 %v5830_v49  ;;  %v1003_v16 = vand.u32 4294901760, %v5881_v47  ;;  %v5138_v17 = vpack.c.bf16 %v5804_v28, %v5802_v26  ;;  %v5162_v1 = vpack.c.bf16 %v437_v50, %v430_v48  ;;  %v5234_v60 = vpack.c.bf16 %v975_v5, %v968_v4  ;;  %v139_v26 = vpop.xlane.xlu0 %138  ;;  %v108_v50 = vld [vmem:[#allocation2 + $0x58] sm:$0xff] }
  0xcf   :  { %5124 = vmatpush3.bf16.msra.mxu0 %v5123_v30  ;;  %5194 = vmatprep.subr.bf16.mxu1 %v5620_v34  ;;  %v5198_v30 = vpack.c.bf16 %v977_v7, %v970_v3  ;;  %v997_v35 = vsub.f32 %v5879_v43, %v996_v12  ;;  %v460_v57 = vand.u32 4294901760, %v459_v22  ;;  %v467_v58 = vand.u32 4294901760, %v466_v27 }
  0xd0   :  { %5125 = vmatprep.subr.bf16.mxu0 %v5620_v34  ;;  %4521 = vmatprep.mubr.msk.f32.mxu0 %vm5621_vm1, %v5619_v15  ;;  %v1004_v37 = vsub.f32 %v5881_v47, %v1003_v16  ;;  %v5210_v22 = vpack.c.bf16 %v5826_v46, %v5824_v45  ;;  %v5141_v27 = vpack.c.bf16 %v5835_v54, %v5833_v53  ;;  %v107_v53 = vld [vmem:[#allocation2 + $0x50] sm:$0xff] }
  0xd1   :  { %4617 = vmatmul.mubr.f32.vlgmr.msra.gmra.mrb[0].mxu1 %v5830_v49  ;;  %v5132_v7 = vpack.c.bf16 %v467_v58, %v460_v57  ;;  %v5165_v13 = vpack.c.bf16 %v451_v20, %v444_v18  ;;  %v5168_v21 = vpack.c.bf16 %v465_v61, %v458_v59  ;;  %v204_v18 = vld [vmem:[#allocation3 + $0x50] sm:$0xff]  ;;  %v109_v61 = vld [vmem:[#allocation2 + $0x60] sm:$0xff] }
  0xd2   :  { %5196 = vmatpush3.bf16.msra.mxu1 %v5195_v63  ;;  %4635 = vmatprep.mubr.msk.f32.mxu1 %vm5621_vm1, %v5619_v15  ;;  %v5201_v63 = vpack.c.bf16 %v991_v33, %v984_v31  ;;  %v1005_v3 = vand.u32 4294901760, %v1004_v37  ;;  %v5144_v31 = vpack.c.bf16 %v5867_v29, %v5865_v24  ;;  %v5216_v33 = vpack.c.bf16 %v5881_v47, %v5879_v43  ;;  %v236_v46 = vpop.xlane.xlu0 %235 }
  0xd3   :  { %5127 = vmatpush3.bf16.msra.mxu0 %v5126_v0  ;;  %5197 = vmatprep.subr.bf16.mxu1 %v5620_v34  ;;  %v998_v0 = vand.u32 4294901760, %v997_v35  ;;  %v5159_v35 = vpack.c.bf16 %v423_v25, %v416_v39  ;;  %v5231_v37 = vpack.c.bf16 %v961_v44, %v954_v19  ;;  %v5237_v19 = vpack.c.bf16 %v989_v56, %v982_v40  ;;  %v203_v39 = vld [vmem:[#allocation3 + $0x48] sm:$0xff] }
  0xd4   :  { %5128 = vmatprep.subr.bf16.mxu0 %v5620_v34  ;;  %v5240_v25 = vpack.c.bf16 %v1003_v16, %v996_v12  ;;  %v110_v56 = vld [vmem:[#allocation2 + $0x68] sm:$0xff] }
  0xd5   :  { %v5204_v9 = vpack.c.bf16 %v1005_v3, %v998_v0  ;;  %v207_v3 = vld [vmem:[#allocation3 + $0x68] sm:$0xff] }
  0xd6   :  { %5199 = vmatpush3.bf16.msra.mxu1 %v5198_v30  ;;  %v5213_v30 = vpack.c.bf16 %v5859_v11, %v5853_v6  ;;  %v145_v4 = vpop.xlane.xlu0 %144  ;;  %v205_v6 = vld [vmem:[#allocation3 + $0x58] sm:$0xff] }
  0xd7   :  { %5130 = vmatpush3.bf16.msra.mxu0 %v5129_v38  ;;  %5200 = vmatprep.subr.bf16.mxu1 %v5620_v34  ;;  %v171_v5 = vadd.f32 %v145_v4, %v107_v53 }
  0xd8   :  { %5131 = vmatprep.subr.bf16.mxu0 %v5620_v34 }
  0xd9   :  { %188 = vst.msk [vmem:[#allocation2 + $0x50] sm:$0xff] %vm32_vm0, %v171_v5 }
  0xda   :  { %5202 = vmatpush3.bf16.msra.mxu1 %v5201_v63 }
  0xdb   :  { %5133 = vmatpush3.bf16.msra.mxu0 %v5132_v7  ;;  %5203 = vmatprep.subr.bf16.mxu1 %v5620_v34  ;;  %v206_v7 = vld [vmem:[#allocation3 + $0x60] sm:$0xff] }
  0xdc   :  { %5134 = vmatprep.subr.bf16.mxu0 %v5620_v34 }
  0xde   :  { %5205 = vmatpush3.bf16.msra.mxu1 %v5204_v9  ;;  %4522 = vmatmul.mubr.f32.vlgmr.msra.gmra.mrb[0].mxu0 %v5737_v32 }
  0xdf   :  { %5136 = vmatpush3.bf16.msra.mxu0 %v5135_v10  ;;  %5206 = vmatprep.subr.bf16.mxu1 %v5620_v34 }
  0xe0   :  { %5137 = vmatprep.subr.bf16.mxu0 %v5620_v34  ;;  %4540 = vmatprep.mubr.msk.f32.mxu0 %vm5621_vm1, %v5619_v15 }
  0xe1   :  { %4636 = vmatmul.mubr.f32.vlgmr.msra.gmra.mrb[0].mxu1 %v5737_v32 }
  0xe2   :  { %5208 = vmatpush3.bf16.msra.mxu1 %v5207_v62  ;;  %4654 = vmatprep.mubr.msk.f32.mxu1 %vm5621_vm1, %v5619_v15 }
  0xe3   :  { %5139 = vmatpush3.bf16.msra.mxu0 %v5138_v17  ;;  %5209 = vmatprep.subr.bf16.mxu1 %v5620_v34 }
  0xe4   :  { %5140 = vmatprep.subr.bf16.mxu0 %v5620_v34 }
  0xe6   :  { %5211 = vmatpush3.bf16.msra.mxu1 %v5210_v22  ;;  %v112_v22 = vld [vmem:[#allocation2 + $0x78] sm:$0xff] }
  0xe7   :  { %5142 = vmatpush3.bf16.msra.mxu0 %v5141_v27  ;;  %5212 = vmatprep.subr.bf16.mxu1 %v5620_v34  ;;  %v111_v27 = vld [vmem:[#allocation2 + $0x70] sm:$0xff] }
  0xe8   :  { %5143 = vmatprep.subr.bf16.mxu0 %v5620_v34 }
  0xea   :  { %5214 = vmatpush3.bf16.msra.mxu1 %v5213_v30 }
  0xeb   :  { %5145 = vmatpush3.bf16.msra.mxu0 %v5144_v31  ;;  %5215 = vmatprep.subr.bf16.mxu1 %v5620_v34 }
  0xec   :  { %5146 = vmatprep.subr.bf16.mxu0 %v5620_v34 }
  0xee   :  { %5217 = vmatpush3.bf16.msra.mxu1 %v5216_v33  ;;  %4541 = vmatmul.mubr.f32.vlgmr.msra.gmra.mrb[0].mxu0 %v5759_v52 }
  0xef   :  { %5148 = vmatpush3.bf16.msra.mxu0 %v5755_v51  ;;  %5218 = vmatprep.subr.bf16.mxu1 %v5620_v34 }
  0xf0   :  { %5149 = vmatprep.subr.bf16.mxu0 %v5620_v34  ;;  %4559 = vmatprep.mubr.msk.f32.mxu0 %vm5621_vm1, %v5619_v15 }
  0xf1   :  { %4655 = vmatmul.mubr.f32.vlgmr.msra.gmra.mrb[0].mxu1 %v5759_v52 }
  0xf2   :  { %5220 = vmatpush3.bf16.msra.mxu1 %v5741_v36  ;;  %4673 = vmatprep.mubr.msk.f32.mxu1 %vm5621_vm1, %v5619_v15 }
  0xf3   :  { %5151 = vmatpush3.bf16.msra.mxu0 %v5775_v2  ;;  %5221 = vmatprep.subr.bf16.mxu1 %v5620_v34 }
  0xf4   :  { %5152 = vmatprep.subr.bf16.mxu0 %v5620_v34 }
  0xf6   :  { %5223 = vmatpush3.bf16.msra.mxu1 %v5788_v14 }
  0xf7   :  { %5154 = vmatpush3.bf16.msra.mxu0 %v5818_v41  ;;  %5224 = vmatprep.subr.bf16.mxu1 %v5620_v34 }
  0xf8   :  { %5155 = vmatprep.subr.bf16.mxu0 %v5620_v34 }
  0xfa   :  { %5226 = vmatpush3.bf16.msra.mxu1 %v5837_v55 }
  0xfb   :  { %5157 = vmatpush3.bf16.msra.mxu0 %v5863_v23  ;;  %5227 = vmatprep.subr.bf16.mxu1 %v5620_v34 }
  0xfc   :  { %5158 = vmatprep.subr.bf16.mxu0 %v5620_v34 }
  0xfe   :  { %5229 = vmatpush3.bf16.msra.mxu1 %v5877_v42  ;;  %4560 = vmatmul.mubr.f32.vlgmr.msra.gmra.mrb[0].mxu0 %v5780_v8 }
  0xff   :  { %5160 = vmatpush3.bf16.msra.mxu0 %v5159_v35  ;;  %5230 = vmatprep.subr.bf16.mxu1 %v5620_v34 }
 0x100   :  { %5161 = vmatprep.subr.bf16.mxu0 %v5620_v34  ;;  %4578 = vmatprep.mubr.msk.f32.mxu0 %vm5621_vm1, %v5619_v15 }
 0x101   :  { %4674 = vmatmul.mubr.f32.vlgmr.msra.gmra.mrb[0].mxu1 %v5780_v8 }
 0x102   :  { %5232 = vmatpush3.bf16.msra.mxu1 %v5231_v37  ;;  %4692 = vmatprep.mubr.msk.f32.mxu1 %vm5621_vm1, %v5619_v15  ;;  %v2242_v37 = vld [vmem:[#allocation2 + $0x50] sm:$0xff] }
 0x103   :  { %5163 = vmatpush3.bf16.msra.mxu0 %v5162_v1  ;;  %5233 = vmatprep.subr.bf16.mxu1 %v5620_v34 }
 0x104   :  { %5164 = vmatprep.subr.bf16.mxu0 %v5620_v34 }
 0x106   :  { %5235 = vmatpush3.bf16.msra.mxu1 %v5234_v60 }
 0x107   :  { %5166 = vmatpush3.bf16.msra.mxu0 %v5165_v13  ;;  %5236 = vmatprep.subr.bf16.mxu1 %v5620_v34  ;;  %v2250_v13 = vmul.f32 0.00390625, %v2242_v37 }
 0x108   :  { %5167 = vmatprep.subr.bf16.mxu0 %v5620_v34 }
 0x10a   :  { %5238 = vmatpush3.bf16.msra.mxu1 %v5237_v19 }
 0x10b   :  { %5169 = vmatpush3.bf16.msra.mxu0 %v5168_v21  ;;  %5239 = vmatprep.subr.bf16.mxu1 %v5620_v34 }
 0x10c   :  { %5170 = vmatprep.subr.bf16.mxu0 %v5620_v34 }
 0x10e   :  { %5241 = vmatpush3.bf16.msra.mxu1 %v5240_v25  ;;  %4579 = vmatmul.mubr.f32.vlgmr.msra.gmra.mrb[0].mxu0 %v5737_v32 }
 0x10f   :  { %5172 = vmatpush3.bf16.msra.mxu0 %v5755_v51  ;;  %5242 = vmatprep.subr.bf16.mxu1 %v5620_v34  ;;  %v105_v51 = vld [vmem:[#allocation2 + $0x40] sm:$0xff] }
 0x110   :  { %5173 = vmatprep.subr.bf16.mxu0 %v5620_v34  ;;  %4597 = vmatprep.mubr.msk.f32.mxu0 %vm5621_vm1, %v5619_v15  ;;  %v169_v28 = vadd.f32 %v139_v26, %v105_v51 }
 0x111   :  { %4693 = vmatmul.mubr.f32.vlgmr.msra.gmra.mrb[0].mxu1 %v5737_v32 }
 0x112   :  { %5244 = vmatpush3.bf16.msra.mxu1 %v5741_v36  ;;  %4711 = vmatprep.mubr.msk.f32.mxu1 %vm5621_vm1, %v5619_v15  ;;  %v106_v36 = vld [vmem:[#allocation2 + $0x48] sm:$0xff]  ;;  %186 = vst.msk [vmem:[#allocation2 + $0x40] sm:$0xff] %vm32_vm0, %v169_v28  ;;  %v294_v28 = vld [vmem:[%s6600_s2] sm:$0xff] }
 0x113   :  { %5175 = vmatpush3.bf16.msra.mxu0 %v5775_v2  ;;  %5245 = vmatprep.subr.bf16.mxu1 %v5620_v34  ;;  %v142_v2 = vpop.xlane.xlu1 %141 }
 0x114   :  { %5176 = vmatprep.subr.bf16.mxu0 %v5620_v34 }
 0x116   :  { %5247 = vmatpush3.bf16.msra.mxu1 %v5788_v14  ;;  %v170_v14 = vadd.f32 %v142_v2, %v106_v36 }
 0x117   :  { %5178 = vmatpush3.bf16.msra.mxu0 %v5818_v41  ;;  %5248 = vmatprep.subr.bf16.mxu1 %v5620_v34  ;;  %v202_v41 = vld [vmem:[#allocation3 + $0x40] sm:$0xff]  ;;  %v239_v44 = vpop.xlane.xlu1 %238 }
 0x118   :  { %5179 = vmatprep.subr.bf16.mxu0 %v5620_v34  ;;  %187 = vst.msk [vmem:[#allocation2 + $0x48] sm:$0xff] %vm32_vm0, %v170_v14  ;;  %v267_v45 = vmax.f32 %v203_v39, %v239_v44  ;;  %v266_v48 = vmax.f32 %v202_v41, %v236_v46  ;;  %v2272_v39 = vand.u32 4294901760, %v2250_v13 }
 0x119   :  { %v2240_v20 = vld [vmem:[#allocation2 + $0x40] sm:$0xff] }
 0x11a   :  { %5250 = vmatpush3.bf16.msra.mxu1 %v5837_v55  ;;  %283 = vst.msk [vmem:[#allocation3 + $0x48] sm:$0xff] %vm32_vm0, %v267_v45  ;;  %282 = vst.msk [vmem:[#allocation3 + $0x40] sm:$0xff] %vm32_vm0, %v266_v48  ;;  %v2248_v29 = vmul.f32 0.00390625, %v2240_v20  ;;  %v1409_v45 = vsel %vm1407_vm3, %v294_v28, 0  ;;  %v6082_v53 = vsub.f32 %v2250_v13, %v2272_v39 }
 0x11b   :  { %5181 = vmatpush3.bf16.msra.mxu0 %v5863_v23  ;;  %5251 = vmatprep.subr.bf16.mxu1 %v5620_v34  ;;  %v148_v54 = vpop.xlane.xlu1 %147  ;;  %v6078_v48 = vand.u32 4294901760, %v1409_v45 }
 0x11c   :  { %v172_v55 = vadd.f32 %v148_v54, %v108_v50  ;;  %v2266_v59 = vand.u32 4294901760, %v2248_v29 }
 0x11e   :  { %5253 = vmatpush3.bf16.msra.mxu1 %v5877_v42  ;;  %4598 = vmatmul.mubr.f32.vlgmr.msra.gmra.mrb[0].mxu0 %v5737_v32  ;;  %189 = vst.msk [vmem:[#allocation2 + $0x58] sm:$0xff] %vm32_vm0, %v172_v55  ;;  %v242_v42 = vpop.xlane.xlu0 %241  ;;  %v6064_v57 = vsub.f32 %v2248_v29, %v2266_v59  ;;  %v2365_v29 = vand.u32 4294901760, %v6082_v53 }
 0x11f   :  { %5254 = vmatprep.subr.bf16.mxu1 %v5620_v34  ;;  %v2241_v11 = vld [vmem:[#allocation2 + $0x48] sm:$0xff]  ;;  %v245_v24 = vpop.xlane.xlu1 %244  ;;  %v268_v47 = vmax.f32 %v204_v18, %v242_v42 }
 0x120   :  { %v2249_v23 = vmul.f32 0.00390625, %v2241_v11  ;;  %v269_v40 = vmax.f32 %v205_v6, %v245_v24  ;;  %v6090_v6 = vsub.f32 %v1409_v45, %v6078_v48  ;;  %v2351_v11 = vand.u32 4294901760, %v6064_v57  ;;  %v296_v45 = vld [vmem:[%s6600_s2 + $0x10] sm:$0xff] }
 0x121   :  { %4712 = vmatmul.mubr.f32.vlgmr.msra.gmra.mrb[0].mxu1 %v5737_v32  ;;  %284 = vst.msk [vmem:[#allocation3 + $0x50] sm:$0xff] %vm32_vm0, %v268_v47 }
 0x122   :  { %4814 = vmatprep.mubr.msk.f32.mxu1 %vm5621_vm1, %v5619_v15  ;;  %v2269_v43 = vand.u32 4294901760, %v2249_v23  ;;  %285 = vst.msk [vmem:[#allocation3 + $0x58] sm:$0xff] %vm32_vm0, %v269_v40  ;;  %v151_v63 = vpop.xlane.xlu0 %150  ;;  %v6096_v20 = vand.u32 4294901760, %v6090_v6 }
 0x123   :  { %v154_v16 = vpop.xlane.xlu1 %153  ;;  %v173_v0 = vadd.f32 %v151_v63, %v109_v61  ;;  %v2366_v61 = vsub.f32 %v6082_v53, %v2365_v29 }
 0x124   :  { %v6059_v12 = vsub.f32 %v2249_v23, %v2269_v43  ;;  %v6062_v38 = vpack.c.bf16 %v2269_v43, %v2266_v59  ;;  %v174_v58 = vadd.f32 %v154_v16, %v110_v56  ;;  %v2352_v23 = vsub.f32 %v6064_v57, %v2351_v11 }
 0x125   :  { %190 = vst.msk [vmem:[#allocation2 + $0x60] sm:$0xff] %vm32_vm0, %v173_v0  ;;  %v2243_v1 = vld [vmem:[#allocation2 + $0x58] sm:$0xff]  ;;  %v1505_v43 = vsub.f32 %v6090_v6, %v6096_v20 }
 0x126   :  { %5256 = vmatpush3.bf16.msra.mxu1 %v6062_v38  ;;  %191 = vst.msk [vmem:[#allocation2 + $0x68] sm:$0xff] %vm32_vm0, %v174_v58  ;;  %v248_v62 = vpop.xlane.xlu0 %247  ;;  %v2251_v19 = vmul.f32 0.00390625, %v2243_v1  ;;  %v2358_v18 = vand.u32 4294901760, %v6059_v12  ;;  %v2353_v47 = vand.u32 4294901760, %v2352_v23  ;;  %v5279_v13 = vpack.c.bf16 %v6059_v12, %v6064_v57 }
 0x127   :  { %5257 = vmatprep.subr.bf16.mxu1 %v5620_v34  ;;  %v251_v9 = vpop.xlane.xlu1 %250  ;;  %v270_v17 = vmax.f32 %v206_v7, %v248_v62  ;;  %v6122_v63 = vand.u32 4294901760, %v1505_v43 }
 0x128   :  { %v271_v10 = vmax.f32 %v207_v3, %v251_v9  ;;  %v2275_v41 = vand.u32 4294901760, %v2251_v19  ;;  %v2359_v24 = vsub.f32 %v6059_v12, %v2358_v18  ;;  %v2367_v3 = vand.u32 4294901760, %v2366_v61 }
 0x129   :  { %286 = vst.msk [vmem:[#allocation3 + $0x60] sm:$0xff] %vm32_vm0, %v270_v17  ;;  %4716 = vmatprep.mubr.f32.mxu0 %v6122_v63 }
 0x12a   :  { %287 = vst.msk [vmem:[#allocation3 + $0x68] sm:$0xff] %vm32_vm0, %v271_v10  ;;  %v6080_v50 = vpack.c.bf16 %v2275_v41, %v2272_v39  ;;  %v6084_v54 = vsub.f32 %v2251_v19, %v2275_v41  ;;  %v2360_v59 = vand.u32 4294901760, %v2359_v24  ;;  %v209_v39 = vld [vmem:[#allocation3 + $0x78] sm:$0xff] }
 0x12c   :  { %v2244_v60 = vld [vmem:[#allocation2 + $0x60] sm:$0xff]  ;;  %5259 = vmatpush3.bf16.msra.mxu1 %v6080_v50  ;;  %v2372_v40 = vand.u32 4294901760, %v6084_v54  ;;  %v5267_v0 = vpack.c.bf16 %v2360_v59, %v2353_v47  ;;  %v299_v47 = vld [vmem:[%s6600_s2 + $0x28] sm:$0xff]  ;;  %v300_v59 = vld [vmem:[%s6600_s2 + $0x30] sm:$0xff] }
 0x12d   :  { %v2245_v21 = vld [vmem:[#allocation2 + $0x68] sm:$0xff]  ;;  %v2252_v25 = vmul.f32 0.00390625, %v2244_v60  ;;  %5260 = vmatprep.subr.bf16.mxu1 %v5620_v34 }
 0x12e   :  { %v2253_v2 = vmul.f32 0.00390625, %v2245_v21  ;;  %v2373_v16 = vsub.f32 %v6084_v54, %v2372_v40  ;;  %v5306_v12 = vpack.c.bf16 %v2372_v40, %v2365_v29  ;;  %v298_v29 = vld [vmem:[%s6600_s2 + $0x20] sm:$0xff] }
 0x12f   :  { %v2278_v44 = vand.u32 4294901760, %v2252_v25  ;;  %v1421_v43 = vsel %vm1407_vm3, %v298_v29, 0 }
 0x130   :  { %v2281_v46 = vand.u32 4294901760, %v2253_v2  ;;  %v2374_v7 = vand.u32 4294901760, %v2373_v16  ;;  %v6239_v16 = vand.u32 4294901760, %v1421_v43 }
 0x131   :  { %v6111_v56 = vsub.f32 %v2252_v25, %v2278_v44 }
 0x132   :  { %v6087_v4 = vpack.c.bf16 %v2281_v46, %v2278_v44  ;;  %v6120_v58 = vsub.f32 %v2253_v2, %v2281_v46  ;;  %v208_v44 = vld [vmem:[#allocation3 + $0x70] sm:$0xff] }
 0x133   :  { %v2379_v62 = vand.u32 4294901760, %v6111_v56 }
 0x134   :  { %5262 = vmatpush3.bf16.msra.mxu1 %v6087_v4  ;;  %v2386_v17 = vand.u32 4294901760, %v6120_v58  ;;  %v5285_v2 = vpack.c.bf16 %v6120_v58, %v6111_v56 }
 0x135   :  { %5263 = vmatprep.subr.bf16.mxu1 %v5620_v34 }
 0x136   :  { %v5309_v57 = vpack.c.bf16 %v2386_v17, %v2379_v62 }
 0x13a   :  { %v160_v30 = vpop.xlane.xlu1 %159 }
 0x13b   :  { %v176_v31 = vadd.f32 %v160_v30, %v112_v22  ;;  %v2380_v22 = vsub.f32 %v6111_v56, %v2379_v62  ;;  %v2387_v30 = vsub.f32 %v6120_v58, %v2386_v17  ;;  %v1424_v58 = vsel %vm1407_vm3, %v299_v47, 0 }
 0x13c   :  { %v6252_v17 = vand.u32 4294901760, %v1424_v58 }
 0x13d   :  { %193 = vst.msk [vmem:[#allocation2 + $0x78] sm:$0xff] %vm32_vm0, %v176_v31  ;;  %v2381_v31 = vand.u32 4294901760, %v2380_v22  ;;  %v2388_v37 = vand.u32 4294901760, %v2387_v30  ;;  %v6255_v22 = vsub.f32 %v1421_v43, %v6239_v16  ;;  %v2258_v43 = vld [vmem:[#allocation3 + $0x48] sm:$0xff] }
 0x13e   :  { %v157_v33 = vpop.xlane.xlu0 %156 }
 0x13f   :  { %v175_v35 = vadd.f32 %v157_v33, %v111_v27  ;;  %v5270_v27 = vpack.c.bf16 %v2374_v7, %v2367_v3  ;;  %v5273_v19 = vpack.c.bf16 %v2388_v37, %v2381_v31  ;;  %v257_v28 = vpop.xlane.xlu1 %256  ;;  %v301_v3 = vld [vmem:[%s6600_s2 + $0x38] sm:$0xff] }
 0x140   :  { %v1430_v30 = vsel %vm1407_vm3, %v301_v3, 0 }
 0x141   :  { %192 = vst.msk [vmem:[#allocation2 + $0x70] sm:$0xff] %vm32_vm0, %v175_v35 }
 0x142   :  { %v254_v41 = vpop.xlane.xlu0 %253 }
 0x144   :  { %v2247_v51 = vld [vmem:[#allocation2 + $0x78] sm:$0xff] }
 0x145   :  { %v2255_v26 = vmul.f32 0.00390625, %v2247_v51  ;;  %v5282_v51 = vpack.c.bf16 %v6084_v54, %v6082_v53  ;;  %v273_v53 = vmax.f32 %v209_v39, %v257_v28  ;;  %v272_v54 = vmax.f32 %v208_v44, %v254_v41 }
 0x147   :  { %v2287_v5 = vand.u32 4294901760, %v2255_v26  ;;  %289 = vst.msk [vmem:[#allocation3 + $0x78] sm:$0xff] %vm32_vm0, %v273_v53  ;;  %288 = vst.msk [vmem:[#allocation3 + $0x70] sm:$0xff] %vm32_vm0, %v272_v54 }
 0x148   :  { %v2246_v36 = vld [vmem:[#allocation2 + $0x70] sm:$0xff] }
 0x149   :  { %v2254_v14 = vmul.f32 0.00390625, %v2246_v36  ;;  %v6128_v10 = vsub.f32 %v2255_v26, %v2287_v5  ;;  %v5303_v26 = vpack.c.bf16 %v2358_v18, %v2351_v11 }
 0x14b   :  { %v2284_v55 = vand.u32 4294901760, %v2254_v14  ;;  %v2400_v35 = vand.u32 4294901760, %v6128_v10 }
 0x14d   :  { %v6107_v42 = vpack.c.bf16 %v2287_v5, %v2284_v55  ;;  %v6126_v9 = vsub.f32 %v2254_v14, %v2284_v55  ;;  %v2401_v60 = vsub.f32 %v6128_v10, %v2400_v35  ;;  %v1415_v55 = vsel %vm1407_vm3, %v296_v45, 0 }
 0x14e   :  { %v6193_v5 = vand.u32 4294901760, %v1415_v55 }
 0x14f   :  { %5265 = vmatpush3.bf16.msra.mxu1 %v6107_v42  ;;  %v2393_v33 = vand.u32 4294901760, %v6126_v9  ;;  %v2402_v25 = vand.u32 4294901760, %v2401_v60  ;;  %v5288_v14 = vpack.c.bf16 %v6128_v10, %v6126_v9 }
 0x150   :  { %5266 = vmatprep.subr.bf16.mxu1 %v5620_v34  ;;  %v6201_v11 = vsub.f32 %v1415_v55, %v6193_v5 }
 0x151   :  { %v2394_v1 = vsub.f32 %v6126_v9, %v2393_v33  ;;  %v5312_v46 = vpack.c.bf16 %v2400_v35, %v2393_v33 }
 0x152   :  { %4815 = vmatmul.mubr.f32.vlgmr.msra.gmra.mrb[2].mxu1 %v5830_v49  ;;  %v6206_v18 = vand.u32 4294901760, %v6201_v11 }
 0x153   :  { %5268 = vmatpush3.bf16.msra.mxu1 %v5267_v0  ;;  %4833 = vmatprep.mubr.msk.f32.mxu1 %vm5621_vm1, %v5619_v15  ;;  %v2395_v21 = vand.u32 4294901760, %v2394_v1  ;;  %v1427_v0 = vsel %vm1407_vm3, %v300_v59, 0  ;;  %v2807_v59 = vand.u32 4294901760, %v2258_v43 }
 0x154   :  { %5269 = vmatprep.subr.bf16.mxu1 %v5620_v34 }
 0x155   :  { %v5276_v36 = vpack.c.bf16 %v2402_v25, %v2395_v21  ;;  %v6271_v25 = vand.u32 4294901760, %v6255_v22 }
 0x157   :  { %5271 = vmatpush3.bf16.msra.mxu1 %v5270_v27  ;;  %v6257_v27 = vand.u32 4294901760, %v1427_v0  ;;  %v1545_v28 = vsub.f32 %v6255_v22, %v6271_v25 }
 0x158   :  { %5272 = vmatprep.subr.bf16.mxu1 %v5620_v34 }
 0x159   :  { %v6300_v54 = vand.u32 4294901760, %v1545_v28 }
 0x15b   :  { %5274 = vmatpush3.bf16.msra.mxu1 %v5273_v19  ;;  %v6268_v19 = vand.u32 4294901760, %v1430_v30 }
 0x15c   :  { %5275 = vmatprep.subr.bf16.mxu1 %v5620_v34 }
 0x15f   :  { %5277 = vmatpush3.bf16.msra.mxu1 %v5276_v36  ;;  %v6274_v36 = vsub.f32 %v1427_v0, %v6257_v27  ;;  %v2260_v0 = vld [vmem:[#allocation3 + $0x58] sm:$0xff] }
 0x160   :  { %5278 = vmatprep.subr.bf16.mxu1 %v5620_v34 }
 0x161   :  { %v6290_v39 = vand.u32 4294901760, %v6274_v36 }
 0x162   :  { %4834 = vmatmul.mubr.f32.vlgmr.msra.gmra.mrb[2].mxu1 %v5737_v32 }
 0x163   :  { %5280 = vmatpush3.bf16.msra.mxu1 %v5279_v13  ;;  %4852 = vmatprep.mubr.msk.f32.mxu1 %vm5621_vm1, %v5619_v15  ;;  %v6266_v13 = vsub.f32 %v1424_v58, %v6252_v17  ;;  %v1565_v55 = vsub.f32 %v6274_v36, %v6290_v39  ;;  %v2259_v58 = vld [vmem:[#allocation3 + $0x50] sm:$0xff] }
 0x164   :  { %5281 = vmatprep.subr.bf16.mxu1 %v5620_v34 }
 0x165   :  { %v6310_v29 = vand.u32 4294901760, %v1565_v55 }
 0x167   :  { %5283 = vmatpush3.bf16.msra.mxu1 %v5282_v51 }
 0x168   :  { %5284 = vmatprep.subr.bf16.mxu1 %v5620_v34 }
 0x16b   :  { %5286 = vmatpush3.bf16.msra.mxu1 %v5285_v2 }
 0x16c   :  { %5287 = vmatprep.subr.bf16.mxu1 %v5620_v34 }
 0x16f   :  { %5289 = vmatpush3.bf16.msra.mxu1 %v5288_v14 }
 0x170   :  { %5290 = vmatprep.subr.bf16.mxu1 %v5620_v34 }
 0x172   :  { %4853 = vmatmul.mubr.f32.vlgmr.msra.gmra.mrb[2].mxu1 %v5759_v52 }
 0x173   :  { %5292 = vmatpush3.bf16.msra.mxu1 %v6062_v38  ;;  %4871 = vmatprep.mubr.msk.f32.mxu1 %vm5621_vm1, %v5619_v15 }
 0x174   :  { %5293 = vmatprep.subr.bf16.mxu1 %v5620_v34 }
 0x177   :  { %5295 = vmatpush3.bf16.msra.mxu1 %v6080_v50 }
 0x178   :  { %5296 = vmatprep.subr.bf16.mxu1 %v5620_v34 }
 0x17b   :  { %5298 = vmatpush3.bf16.msra.mxu1 %v6087_v4 }
 0x17c   :  { %5299 = vmatprep.subr.bf16.mxu1 %v5620_v34 }
 0x17f   :  { %5301 = vmatpush3.bf16.msra.mxu1 %v6107_v42 }
 0x180   :  { %5302 = vmatprep.subr.bf16.mxu1 %v5620_v34 }
 0x182   :  { %4872 = vmatmul.mubr.f32.vlgmr.msra.gmra.mrb[2].mxu1 %v5780_v8 }
 0x183   :  { %5304 = vmatpush3.bf16.msra.mxu1 %v5303_v26  ;;  %4890 = vmatprep.mubr.msk.f32.mxu1 %vm5621_vm1, %v5619_v15 }
 0x184   :  { %5305 = vmatprep.subr.bf16.mxu1 %v5620_v34 }
 0x187   :  { %5307 = vmatpush3.bf16.msra.mxu1 %v5306_v12  ;;  %v6282_v12 = vand.u32 4294901760, %v6266_v13 }
 0x188   :  { %5308 = vmatprep.subr.bf16.mxu1 %v5620_v34 }
 0x18b   :  { %5310 = vmatpush3.bf16.msra.mxu1 %v5309_v57  ;;  %v6285_v57 = vsub.f32 %v1430_v30, %v6268_v19  ;;  %v2813_v30 = vand.u32 4294901760, %v2260_v0 }
 0x18c   :  { %5311 = vmatprep.subr.bf16.mxu1 %v5620_v34 }
 0x18d   :  { %v6298_v53 = vand.u32 4294901760, %v6285_v57 }
 0x18f   :  { %5313 = vmatpush3.bf16.msra.mxu1 %v5312_v46  ;;  %v1555_v46 = vsub.f32 %v6266_v13, %v6282_v12 }
 0x190   :  { %5314 = vmatprep.subr.bf16.mxu1 %v5620_v34 }
 0x192   :  { %4891 = vmatmul.mubr.f32.vlgmr.msra.gmra.mrb[2].mxu1 %v5737_v32 }
 0x193   :  { %5316 = vmatpush3.bf16.msra.mxu1 %v6062_v38  ;;  %4909 = vmatprep.mubr.msk.f32.mxu1 %vm5621_vm1, %v5619_v15  ;;  %v1525_v38 = vsub.f32 %v6201_v11, %v6206_v18 }
 0x194   :  { %5317 = vmatprep.subr.bf16.mxu1 %v5620_v34 }
 0x195   :  { %v1526_v23 = vand.u32 4294901760, %v1525_v38 }
 0x197   :  { %5319 = vmatpush3.bf16.msra.mxu1 %v6080_v50  ;;  %v295_v50 = vld [vmem:[%s6600_s2 + $0x8] sm:$0xff] }
 0x198   :  { %5320 = vmatprep.subr.bf16.mxu1 %v5620_v34  ;;  %v1412_v24 = vsel %vm1407_vm3, %v295_v50, 0 }
 0x199   :  { %v6224_v40 = vand.u32 4294901760, %v1412_v24 }
 0x19b   :  { %5322 = vmatpush3.bf16.msra.mxu1 %v6087_v4  ;;  %v297_v4 = vld [vmem:[%s6600_s2 + $0x18] sm:$0xff]  ;;  %v6237_v61 = vsub.f32 %v1412_v24, %v6224_v40  ;;  %v6305_v24 = vand.u32 4294901760, %v1555_v46 }
 0x19c   :  { %5323 = vmatprep.subr.bf16.mxu1 %v5620_v34 }
 0x19d   :  { %v6250_v62 = vand.u32 4294901760, %v6237_v61 }
 0x19f   :  { %5325 = vmatpush3.bf16.msra.mxu1 %v6107_v42  ;;  %v1418_v42 = vsel %vm1407_vm3, %v297_v4, 0  ;;  %v1515_v60 = vsub.f32 %v6237_v61, %v6250_v62  ;;  %v1575_v4 = vsub.f32 %v6285_v57, %v6298_v53 }
 0x1a0   :  { %v6231_v56 = vand.u32 4294901760, %v1418_v42 }
 0x1a1   :  { %v6279_v26 = vand.u32 4294901760, %v1515_v60 }
 0x1a2   :  { %4910 = vmatmul.mubr.f32.vlgmr.msra.gmra.mrb[2].mxu1 %v5737_v32  ;;  %v6247_v9 = vsub.f32 %v1418_v42, %v6231_v56  ;;  %v2257_v42 = vld [vmem:[#allocation3 + $0x40] sm:$0xff] }
 0x1a3   :  { %5031 = vmatprep.mubr.f32.mxu1 %v1526_v23  ;;  %v2804_v47 = vand.u32 4294901760, %v2257_v42 }
 0x1a4   :  { %v6261_v1 = vand.u32 4294901760, %v6247_v9 }
 0x1a5   :  { %v6351_v3 = vsub.f32 %v2257_v42, %v2804_v47 }
 0x1a6   :  { %v1535_v2 = vsub.f32 %v6247_v9, %v6261_v1 }
 0x1a8   :  { %v6293_v44 = vand.u32 4294901760, %v1535_v2 }
 0x1f1   :  { %v863_v7 = vpop.f32.mrb[0].mxu0 }
 0x1f2   :  { %v4599_v10 = vpop.f32.mrb[1].mxu0  ;;  %v867_v33 = vmax.f32 %v863_v7, 0.0  ;;  %v6353_v7 = vsub.f32 %v2258_v43, %v2807_v59 }
 0x1f3   :  { %v2810_v10 = vand.u32 4294901760, %v2259_v58 }
 0x1f4   :  { %v1401_v31 = vpop.f32.mrb[0].mxu1 }
 0x1f5   :  { %v1405_v35 = vmax.f32 %v1401_v31, 0.0  ;;  %v4713_v37 = vpop.f32.mrb[1].mxu1  ;;  %v6355_v31 = vpack.c.bf16 %v2807_v59, %v2804_v47  ;;  %v6362_v60 = vsub.f32 %v2259_v58, %v2810_v10  ;;  %v6367_v2 = vpack.c.bf16 %v2813_v30, %v2810_v10 }
 0x1f6   :  { %v6607_v37 = vand.u32 4294901760, %v6351_v3 }
 0x1f7   :  { %v1406_v21 = vadd.f32 %v1405_v35, %v867_v33  ;;  %v2261_v33 = vld [vmem:[#allocation3 + $0x60] sm:$0xff]  ;;  %v2262_v35 = vld [vmem:[#allocation3 + $0x68] sm:$0xff] }
 0x1f8   :  { %v2819_v28 = vand.u32 4294901760, %v2262_v35  ;;  %v2890_v46 = vsub.f32 %v6351_v3, %v6607_v37 }
 0x1f9   :  { %v1434_v51 = vsel %vm1432_vm4, %v1406_v21, 0  ;;  %v6364_v21 = vsub.f32 %v2260_v0, %v2813_v30 }
 0x1fa   :  { %v1437_v14 = vand.u32 4294901760, %v1434_v51  ;;  %v6385_v43 = vsub.f32 %v2262_v35, %v2819_v28  ;;  %v2891_v0 = vand.u32 4294901760, %v2890_v46 }
 0x1fc   :  { %v1584_v41 = vsub.f32 %v1434_v51, %v1437_v14  ;;  %4714 = vmatprep.subr.mxu0 %v1437_v14  ;;  %v6602_v51 = vand.u32 4294901760, %v6353_v7 }
 0x1fd   :  { %4715 = vmatpush3.msra.mxu0 %v1437_v14 }
 0x1fe   :  { %4717 = vmatmul.mubr.f32.vlgmr.msra.gmra.mrb[2].mxu0 %v6279_v26  ;;  %v1585_v45 = vand.u32 4294901760, %v1584_v41 }
 0x1ff   :  { %4719 = vmatprep.mubr.f32.mxu0 %v1526_v23  ;;  %v6313_v23 = vand.u32 4294901760, %v1575_v4  ;;  %v6603_v4 = vand.u32 4294901760, %v6364_v21 }
 0x200   :  { %v1586_v38 = vsub.f32 %v1584_v41, %v1585_v45 }
 0x202   :  { %4720 = vmatmul.mubr.f32.gmra.mrb[4].mxu0 %v6293_v44  ;;  %v1587_v50 = vand.u32 4294901760, %v1586_v38  ;;  %v2897_v38 = vsub.f32 %v6353_v7, %v6602_v51  ;;  %v6605_v51 = vand.u32 4294901760, %v6385_v43 }
 0x203   :  { %4722 = vmatprep.mubr.f32.mxu0 %v6300_v54 }
 0x204   :  { %4728 = vmatprep.subr.mxu0 %v1587_v50  ;;  %v2898_v10 = vand.u32 4294901760, %v2897_v38 }
 0x205   :  { %4729 = vmatpush3.msra.mxu0 %v1587_v50  ;;  %v6606_v50 = vand.u32 4294901760, %v6362_v60 }
 0x206   :  { %4723 = vmatmul.mubr.f32.gmra.mrb[6].mxu0 %v6305_v24  ;;  %4742 = vmatprep.subr.mxu0 %v1584_v41  ;;  %v5339_v46 = vpack.c.bf16 %v2898_v10, %v2891_v0 }
 0x207   :  { %4725 = vmatprep.mubr.f32.mxu0 %v6310_v29  ;;  %v2904_v30 = vsub.f32 %v6362_v60, %v6606_v50 }
 0x209   :  { %v2905_v38 = vand.u32 4294901760, %v2904_v30 }
 0x20a   :  { %4726 = vmatmul.mubr.f32.gmra.mrb[8].mxu0 %v6313_v23 }
 0x20b   :  { %4730 = vmatprep.mubr.f32.mxu0 %v6078_v48 }
 0x20e   :  { %4731 = vmatmul.mubr.f32.vlgmr.msra.gmra.mrb[2].mxu0 %v6224_v40 }
 0x20f   :  { %4743 = vmatpush3.msra.mxu0 %v1584_v41  ;;  %4733 = vmatprep.mubr.f32.mxu0 %v6193_v5  ;;  %v2263_v41 = vld [vmem:[#allocation3 + $0x70] sm:$0xff] }
 0x210   :  { %4756 = vmatprep.subr.mxu0 %v1437_v14  ;;  %v2822_v47 = vand.u32 4294901760, %v2263_v41 }
 0x212   :  { %4734 = vmatmul.mubr.f32.gmra.mrb[4].mxu0 %v6231_v56  ;;  %v6399_v35 = vsub.f32 %v2263_v41, %v2822_v47 }
 0x213   :  { %4736 = vmatprep.mubr.f32.mxu0 %v6239_v16 }
 0x216   :  { %4737 = vmatmul.mubr.f32.gmra.mrb[6].mxu0 %v6252_v17 }
 0x217   :  { %4739 = vmatprep.mubr.f32.mxu0 %v6257_v27 }
 0x21a   :  { %4740 = vmatmul.mubr.f32.gmra.mrb[8].mxu0 %v6268_v19 }
 0x21b   :  { %4744 = vmatprep.mubr.f32.mxu0 %v6090_v6 }
 0x21e   :  { %4745 = vmatmul.mubr.f32.vlgmr.msra.gmra.mrb[2].mxu0 %v6237_v61 }
 0x21f   :  { %4757 = vmatpush3.msra.mxu0 %v1437_v14  ;;  %4747 = vmatprep.mubr.f32.mxu0 %v6201_v11 }
 0x220   :  { %4770 = vmatprep.subr.mxu0 %v1585_v45 }
 0x222   :  { %4748 = vmatmul.mubr.f32.gmra.mrb[4].mxu0 %v6247_v9 }
 0x223   :  { %4750 = vmatprep.mubr.f32.mxu0 %v6255_v22 }
 0x226   :  { %4751 = vmatmul.mubr.f32.gmra.mrb[6].mxu0 %v6266_v13 }
 0x227   :  { %4753 = vmatprep.mubr.f32.mxu0 %v6274_v36 }
 0x22a   :  { %4754 = vmatmul.mubr.f32.gmra.mrb[8].mxu0 %v6285_v57 }
 0x22b   :  { %4758 = vmatprep.mubr.f32.mxu0 %v6096_v20 }
 0x22e   :  { %4759 = vmatmul.mubr.f32.vlgmr.msra.gmra.mrb[2].mxu0 %v6250_v62 }
 0x22f   :  { %4771 = vmatpush3.msra.mxu0 %v1585_v45  ;;  %4761 = vmatprep.mubr.f32.mxu0 %v6206_v18  ;;  %v2264_v45 = vld [vmem:[#allocation3 + $0x78] sm:$0xff] }
 0x230   :  { %4784 = vmatprep.subr.mxu0 %v1437_v14  ;;  %v2825_v59 = vand.u32 4294901760, %v2264_v45 }
 0x232   :  { %4762 = vmatmul.mubr.f32.gmra.mrb[4].mxu0 %v6261_v1  ;;  %v6390_v58 = vpack.c.bf16 %v2825_v59, %v2822_v47  ;;  %v2931_v47 = vand.u32 4294901760, %v6399_v35 }
 0x233   :  { %4764 = vmatprep.mubr.f32.mxu0 %v6271_v25 }
 0x236   :  { %4765 = vmatmul.mubr.f32.gmra.mrb[6].mxu0 %v6282_v12 }
 0x237   :  { %4767 = vmatprep.mubr.f32.mxu0 %v6290_v39 }
 0x23a   :  { %4768 = vmatmul.mubr.f32.gmra.mrb[8].mxu0 %v6298_v53 }
 0x23b   :  { %4772 = vmatprep.mubr.f32.mxu0 %v6078_v48 }
 0x23e   :  { %4773 = vmatmul.mubr.f32.vlgmr.msra.gmra.mrb[2].mxu0 %v6224_v40 }
 0x23f   :  { %4785 = vmatpush3.msra.mxu0 %v1437_v14  ;;  %4775 = vmatprep.mubr.f32.mxu0 %v6193_v5  ;;  %v2816_v14 = vand.u32 4294901760, %v2261_v33 }
 0x240   :  { %5326 = vmatprep.subr.bf16.mxu0 %v5620_v34 }
 0x241   :  { %v6376_v55 = vpack.c.bf16 %v2819_v28, %v2816_v14  ;;  %v6383_v42 = vsub.f32 %v2261_v33, %v2816_v14  ;;  %v2911_v33 = vsub.f32 %v6364_v21, %v6603_v4  ;;  %v6401_v14 = vsub.f32 %v2264_v45, %v2825_v59 }
 0x242   :  { %4776 = vmatmul.mubr.f32.gmra.mrb[4].mxu0 %v6231_v56  ;;  %v2925_v45 = vsub.f32 %v6385_v43, %v6605_v51 }
 0x243   :  { %4778 = vmatprep.mubr.f32.mxu0 %v6239_v16  ;;  %v6604_v28 = vand.u32 4294901760, %v6383_v42  ;;  %v2912_v4 = vand.u32 4294901760, %v2911_v33  ;;  %v2938_v59 = vand.u32 4294901760, %v6401_v14  ;;  %v2932_v33 = vsub.f32 %v6399_v35, %v2931_v47 }
 0x244   :  { %v2926_v30 = vand.u32 4294901760, %v2925_v45 }
 0x245   :  { %v2918_v41 = vsub.f32 %v6383_v42, %v6604_v28  ;;  %v5342_v0 = vpack.c.bf16 %v2912_v4, %v2905_v38  ;;  %v2939_v28 = vsub.f32 %v6401_v14, %v2938_v59  ;;  %v2933_v50 = vand.u32 4294901760, %v2932_v33 }
 0x246   :  { %4779 = vmatmul.mubr.f32.gmra.mrb[6].mxu0 %v6252_v17  ;;  %v5351_v4 = vpack.c.bf16 %v6353_v7, %v6351_v3 }
 0x247   :  { %4781 = vmatprep.mubr.f32.mxu0 %v6257_v27  ;;  %v2919_v10 = vand.u32 4294901760, %v2918_v41  ;;  %v2940_v37 = vand.u32 4294901760, %v2939_v28  ;;  %v6610_v28 = vand.u32 4294901760, %v6362_v60 }
 0x249   :  { %v5345_v51 = vpack.c.bf16 %v2926_v30, %v2919_v10 }
 0x24a   :  { %4782 = vmatmul.mubr.f32.gmra.mrb[8].mxu0 %v6268_v19 }
 0x24b   :  { %4786 = vmatprep.mubr.f32.mxu0 %v6078_v48 }
 0x24e   :  { %4787 = vmatmul.mubr.f32.vlgmr.msra.gmra.mrb[2].mxu0 %v6224_v40 }
 0x24f   :  { %5328 = vmatpush3.bf16.msra.mxu0 %v6355_v31  ;;  %4789 = vmatprep.mubr.f32.mxu0 %v6193_v5 }
 0x250   :  { %5329 = vmatprep.subr.bf16.mxu0 %v5620_v34 }
 0x252   :  { %4790 = vmatmul.mubr.f32.gmra.mrb[4].mxu0 %v6231_v56 }
 0x253   :  { %5331 = vmatpush3.bf16.msra.mxu0 %v6367_v2  ;;  %4792 = vmatprep.mubr.f32.mxu0 %v6239_v16 }
 0x254   :  { %5332 = vmatprep.subr.bf16.mxu0 %v5620_v34 }
 0x256   :  { %4793 = vmatmul.mubr.f32.gmra.mrb[6].mxu0 %v6252_v17 }
 0x257   :  { %5334 = vmatpush3.bf16.msra.mxu0 %v6376_v55  ;;  %4795 = vmatprep.mubr.f32.mxu0 %v6257_v27 }
 0x258   :  { %5335 = vmatprep.subr.bf16.mxu0 %v5620_v34 }
 0x25a   :  { %4796 = vmatmul.mubr.f32.gmra.mrb[8].mxu0 %v6268_v19 }
 0x25b   :  { %5337 = vmatpush3.bf16.msra.mxu0 %v6390_v58  ;;  %4928 = vmatprep.mubr.msk.f32.mxu0 %vm5621_vm1, %v5619_v15 }
 0x25c   :  { %5338 = vmatprep.subr.bf16.mxu0 %v5620_v34 }
 0x25e   :  { %4929 = vmatmul.mubr.f32.vlgmr.msra.gmra.mrb[10].mxu0 %v5830_v49  ;;  %v5348_v49 = vpack.c.bf16 %v2940_v37, %v2933_v50  ;;  %v5357_v37 = vpack.c.bf16 %v6385_v43, %v6383_v42  ;;  %v5360_v50 = vpack.c.bf16 %v6401_v14, %v6399_v35  ;;  %v6609_v35 = vand.u32 4294901760, %v6353_v7 }
 0x25f   :  { %5340 = vmatpush3.bf16.msra.mxu0 %v5339_v46  ;;  %4947 = vmatprep.mubr.msk.f32.mxu0 %vm5621_vm1, %v5619_v15  ;;  %v6611_v46 = vand.u32 4294901760, %v6364_v21  ;;  %v6613_v7 = vand.u32 4294901760, %v6385_v43 }
 0x260   :  { %5341 = vmatprep.subr.bf16.mxu0 %v5620_v34 }
 0x261   :  { %v5378_v38 = vpack.c.bf16 %v6611_v46, %v6610_v28 }
 0x263   :  { %5343 = vmatpush3.bf16.msra.mxu0 %v5342_v0 }
 0x264   :  { %5344 = vmatprep.subr.bf16.mxu0 %v5620_v34 }
 0x267   :  { %5346 = vmatpush3.bf16.msra.mxu0 %v5345_v51  ;;  %v5354_v51 = vpack.c.bf16 %v6364_v21, %v6362_v60 }
 0x268   :  { %5347 = vmatprep.subr.bf16.mxu0 %v5620_v34 }
 0x26b   :  { %5349 = vmatpush3.bf16.msra.mxu0 %v5348_v49 }
 0x26c   :  { %5350 = vmatprep.subr.bf16.mxu0 %v5620_v34 }
 0x26e   :  { %4948 = vmatmul.mubr.f32.vlgmr.msra.gmra.mrb[10].mxu0 %v5737_v32 }
 0x26f   :  { %5352 = vmatpush3.bf16.msra.mxu0 %v5351_v4  ;;  %4966 = vmatprep.mubr.msk.f32.mxu0 %vm5621_vm1, %v5619_v15 }
 0x270   :  { %5353 = vmatprep.subr.bf16.mxu0 %v5620_v34 }
 0x273   :  { %5355 = vmatpush3.bf16.msra.mxu0 %v5354_v51 }
 0x274   :  { %5356 = vmatprep.subr.bf16.mxu0 %v5620_v34 }
 0x277   :  { %5358 = vmatpush3.bf16.msra.mxu0 %v5357_v37 }
 0x278   :  { %5359 = vmatprep.subr.bf16.mxu0 %v5620_v34 }
 0x27b   :  { %5361 = vmatpush3.bf16.msra.mxu0 %v5360_v50 }
 0x27c   :  { %5362 = vmatprep.subr.bf16.mxu0 %v5620_v34 }
 0x27e   :  { %4967 = vmatmul.mubr.f32.vlgmr.msra.gmra.mrb[10].mxu0 %v5759_v52  ;;  %v6608_v52 = vand.u32 4294901760, %v6351_v3  ;;  %v6612_v3 = vand.u32 4294901760, %v6383_v42 }
 0x27f   :  { %5364 = vmatpush3.bf16.msra.mxu0 %v6355_v31  ;;  %4985 = vmatprep.mubr.msk.f32.mxu0 %vm5621_vm1, %v5619_v15 }
 0x280   :  { %5365 = vmatprep.subr.bf16.mxu0 %v5620_v34  ;;  %v5375_v14 = vpack.c.bf16 %v6609_v35, %v6608_v52  ;;  %v5381_v41 = vpack.c.bf16 %v6613_v7, %v6612_v3 }
 0x283   :  { %5367 = vmatpush3.bf16.msra.mxu0 %v6367_v2 }
 0x284   :  { %5368 = vmatprep.subr.bf16.mxu0 %v5620_v34 }
 0x287   :  { %5370 = vmatpush3.bf16.msra.mxu0 %v6376_v55 }
 0x288   :  { %5371 = vmatprep.subr.bf16.mxu0 %v5620_v34 }
 0x28b   :  { %5373 = vmatpush3.bf16.msra.mxu0 %v6390_v58 }
 0x28c   :  { %5374 = vmatprep.subr.bf16.mxu0 %v5620_v34 }
 0x28e   :  { %4986 = vmatmul.mubr.f32.vlgmr.msra.gmra.mrb[10].mxu0 %v5780_v8  ;;  %v5384_v8 = vpack.c.bf16 %v2938_v59, %v2931_v47 }
 0x28f   :  { %5376 = vmatpush3.bf16.msra.mxu0 %v5375_v14  ;;  %5004 = vmatprep.mubr.msk.f32.mxu0 %vm5621_vm1, %v5619_v15 }
 0x290   :  { %5377 = vmatprep.subr.bf16.mxu0 %v5620_v34 }
 0x293   :  { %5379 = vmatpush3.bf16.msra.mxu0 %v5378_v38 }
 0x294   :  { %5380 = vmatprep.subr.bf16.mxu0 %v5620_v34 }
 0x297   :  { %5382 = vmatpush3.bf16.msra.mxu0 %v5381_v41 }
 0x298   :  { %5383 = vmatprep.subr.bf16.mxu0 %v5620_v34 }
 0x29b   :  { %5385 = vmatpush3.bf16.msra.mxu0 %v5384_v8 }
 0x29c   :  { %5386 = vmatprep.subr.bf16.mxu0 %v5620_v34 }
 0x29e   :  { %5005 = vmatmul.mubr.f32.vlgmr.msra.gmra.mrb[10].mxu0 %v5737_v32 }
 0x29f   :  { %5388 = vmatpush3.bf16.msra.mxu0 %v6355_v31  ;;  %5023 = vmatprep.mubr.msk.f32.mxu0 %vm5621_vm1, %v5619_v15  ;;  %v6484_v31 = vpop.f32.mrb[2].mxu1 }
 0x2a0   :  { %5389 = vmatprep.subr.bf16.mxu0 %v5620_v34  ;;  %v4911_v60 = vpop.f32.mrb[3].mxu1 }
 0x2a3   :  { %5391 = vmatpush3.bf16.msra.mxu0 %v6367_v2 }
 0x2a4   :  { %5392 = vmatprep.subr.bf16.mxu0 %v5620_v34 }
 0x2a7   :  { %5394 = vmatpush3.bf16.msra.mxu0 %v6376_v55 }
 0x2a8   :  { %5395 = vmatprep.subr.bf16.mxu0 %v5620_v34 }
 0x2ab   :  { %5397 = vmatpush3.bf16.msra.mxu0 %v6390_v58 }
 0x2ae   :  { %5024 = vmatmul.mubr.f32.vlgmr.msra.gmra.mrb[10].mxu0 %v5737_v32 }
 0x2af   :  { %5028 = vmatprep.mubr.f32.mxu0 %v6122_v63 }
 0x321   :  { %v4788_v15 = vpop.f32.mrb[2].mxu0 }
 0x322   :  { %v2184_v21 = vsub.f32 0.0, %v4788_v15  ;;  %v2137_v42 = vpop.f32.mrb[3].mxu0 }
 0x323   :  { %v2183_v43 = vsub.f32 0.0, %v2137_v42 }
 0x324   :  { %v2193_v2 = vmul.f32 1.442695, %v2184_v21 }
 0x325   :  { %v2191_v45 = vmul.f32 1.442695, %v2183_v43  ;;  %v4791_v47 = vpop.f32.mrb[4].mxu0 }
 0x326   :  { %5527 = vpow2.f32 %v2193_v2  ;;  %v2186_v55 = vsub.f32 0.0, %v4791_v47  ;;  %v2149_v59 = vpop.f32.mrb[5].mxu0 }
 0x327   :  { %5529 = vpow2.f32 %v2191_v45  ;;  %v2185_v34 = vsub.f32 0.0, %v2149_v59 }
 0x328   :  { %v2197_v58 = vmul.f32 1.442695, %v2186_v55 }
 0x329   :  { %v2195_v0 = vmul.f32 1.442695, %v2185_v34  ;;  %v4794_v32 = vpop.f32.mrb[6].mxu0 }
 0x32a   :  { %5531 = vpow2.f32 %v2197_v58  ;;  %v2188_v63 = vsub.f32 0.0, %v4794_v32  ;;  %v2161_v10 = vpop.f32.mrb[7].mxu0 }
 0x32b   :  { %5533 = vpow2.f32 %v2195_v0  ;;  %v2187_v30 = vsub.f32 0.0, %v2161_v10 }
 0x32c   :  { %v2201_v33 = vmul.f32 1.442695, %v2188_v63 }
 0x32d   :  { %v2199_v49 = vmul.f32 1.442695, %v2187_v30  ;;  %v4797_v4 = vpop.f32.mrb[8].mxu0 }
 0x32e   :  { %5535 = vpow2.f32 %v2201_v33  ;;  %v2190_v51 = vsub.f32 0.0, %v4797_v4  ;;  %v2173_v37 = vpop.f32.mrb[9].mxu0  ;;  %v2802_v33 = vmax.f32 %v6484_v31, 0.0 }
 0x32f   :  { %5537 = vpow2.f32 %v2199_v49  ;;  %v2189_v50 = vsub.f32 0.0, %v2173_v37 }
 0x330   :  { %v5528_v52 = vpop.eup %5527  ;;  %v2205_v35 = vmul.f32 1.442695, %v2190_v51 }
 0x331   :  { %v5530_v14 = vpop.eup %5529  ;;  %v2208_v28 = vadd.f32 1.0, %v5528_v52  ;;  %v2203_v46 = vmul.f32 1.442695, %v2189_v50 }
 0x332   :  { %v2207_v38 = vadd.f32 1.0, %v5530_v14  ;;  %5539 = vpow2.f32 %v2205_v35 }
 0x333   :  { %5541 = vrcp.f32 %v2208_v28 }
 0x334   :  { %v5532_v3 = vpop.eup %5531  ;;  %5543 = vrcp.f32 %v2207_v38 }
 0x335   :  { %v5534_v7 = vpop.eup %5533  ;;  %v2210_v41 = vadd.f32 1.0, %v5532_v3  ;;  %5545 = vpow2.f32 %v2203_v46 }
 0x336   :  { %v2209_v8 = vadd.f32 1.0, %v5534_v7 }
 0x337   :  { %5547 = vrcp.f32 %v2210_v41 }
 0x338   :  { %v5536_v60 = vpop.eup %5535  ;;  %5549 = vrcp.f32 %v2209_v8 }
 0x339   :  { %v5538_v15 = vpop.eup %5537  ;;  %v2212_v21 = vadd.f32 1.0, %v5536_v60 }
 0x33a   :  { %v2211_v42 = vadd.f32 1.0, %v5538_v15 }
 0x33b   :  { %5551 = vrcp.f32 %v2212_v21 }
 0x33c   :  { %v5540_v43 = vpop.eup %5539  ;;  %5553 = vrcp.f32 %v2211_v42 }
 0x33d   :  { %v5542_v2 = vpop.eup %5541  ;;  %v2214_v45 = vadd.f32 1.0, %v5540_v43 }
 0x33e   :  { %v5544_v47 = vpop.eup %5543  ;;  %2232 = vst.msk [vmem:[%s6601_s3 + $0x8] sm:$0xff] %vm32_vm0, %v5542_v2 }
 0x33f   :  { %v5546_v55 = vpop.eup %5545  ;;  %2231 = vst.msk [vmem:[%s6601_s3] sm:$0xff] %vm32_vm0, %v5544_v47  ;;  %5555 = vrcp.f32 %v2214_v45 }
 0x340   :  { %v2213_v59 = vadd.f32 1.0, %v5546_v55 }
 0x341   :  { %v5548_v34 = vpop.eup %5547 }
 0x342   :  { %v5550_v58 = vpop.eup %5549  ;;  %2234 = vst.msk [vmem:[%s6601_s3 + $0x18] sm:$0xff] %vm32_vm0, %v5548_v34  ;;  %5557 = vrcp.f32 %v2213_v59 }
 0x343   :  { %2233 = vst.msk [vmem:[%s6601_s3 + $0x10] sm:$0xff] %vm32_vm0, %v5550_v58 }
 0x345   :  { %v5552_v0 = vpop.eup %5551 }
 0x346   :  { %v5554_v32 = vpop.eup %5553  ;;  %2236 = vst.msk [vmem:[%s6601_s3 + $0x28] sm:$0xff] %vm32_vm0, %v5552_v0 }
 0x347   :  { %2235 = vst.msk [vmem:[%s6601_s3 + $0x20] sm:$0xff] %vm32_vm0, %v5554_v32 }
 0x349   :  { %v5556_v63 = vpop.eup %5555 }
 0x34a   :  { %2238 = vst.msk [vmem:[%s6601_s3 + $0x38] sm:$0xff] %vm32_vm0, %v5556_v63 }
 0x34c   :  { %v5558_v10 = vpop.eup %5557 }
 0x34d   :  { %2237 = vst.msk [vmem:[%s6601_s3 + $0x30] sm:$0xff] %vm32_vm0, %v5558_v10 }
 0x381   :  { %v3336_v30 = vpop.f32.mrb[10].mxu0 }
 0x382   :  { %v3340_v49 = vmax.f32 %v3336_v30, 0.0  ;;  %v5025_v4 = vpop.f32.mrb[11].mxu0 }
 0x384   :  { %v3341_v51 = vadd.f32 %v3340_v49, %v2802_v33 }
 0x386   :  { %v3343_v37 = vsel %vm1432_vm4, %v3341_v51, 0 }
 0x387   :  { %v3346_v50 = vand.u32 4294901760, %v3343_v37 }
 0x389   :  { %v3493_v52 = vsub.f32 %v3343_v37, %v3346_v50  ;;  %5026 = vmatprep.subr.mxu0 %v3346_v50  ;;  %5398 = vmatprep.subr.mxu1 %v3346_v50 }
 0x38a   :  { %5027 = vmatpush3.msra.mxu0 %v3346_v50  ;;  %5399 = vmatpush3.msra.mxu1 %v3346_v50 }
 0x38b   :  { %5032 = vmatmul.mubr.f32.vlgmr.msra.gmra.mrb[4].mxu1 %v6293_v44  ;;  %v3494_v35 = vand.u32 4294901760, %v3493_v52  ;;  %5029 = vmatmul.mubr.f32.vlgmr.msra.gmra.mrb[12].mxu0 %v6279_v26 }
 0x38c   :  { %5034 = vmatprep.mubr.f32.mxu1 %v6300_v54 }
 0x38d   :  { %v3495_v14 = vsub.f32 %v3493_v52, %v3494_v35 }
 0x38f   :  { %5035 = vmatmul.mubr.f32.gmra.mrb[6].mxu1 %v6305_v24  ;;  %v3496_v31 = vand.u32 4294901760, %v3495_v14 }
 0x390   :  { %5037 = vmatprep.mubr.f32.mxu1 %v6310_v29 }
 0x391   :  { %5040 = vmatprep.subr.mxu1 %v3496_v31 }
 0x392   :  { %5041 = vmatpush3.msra.mxu1 %v3496_v31 }
 0x393   :  { %5038 = vmatmul.mubr.f32.gmra.mrb[8].mxu1 %v6313_v23  ;;  %5054 = vmatprep.subr.mxu1 %v3493_v52 }
 0x394   :  { %5042 = vmatprep.mubr.f32.mxu1 %v6078_v48 }
 0x397   :  { %5043 = vmatmul.mubr.f32.vlgmr.msra.gmra.mrb[10].mxu1 %v6224_v40 }
 0x398   :  { %5055 = vmatpush3.msra.mxu1 %v3493_v52  ;;  %5045 = vmatprep.mubr.f32.mxu1 %v6193_v5 }
 0x399   :  { %5068 = vmatprep.subr.mxu1 %v3346_v50 }
 0x39b   :  { %5046 = vmatmul.mubr.f32.gmra.mrb[4].mxu1 %v6231_v56 }
 0x39c   :  { %5048 = vmatprep.mubr.f32.mxu1 %v6239_v16 }
 0x39f   :  { %5049 = vmatmul.mubr.f32.gmra.mrb[6].mxu1 %v6252_v17 }
 0x3a0   :  { %5051 = vmatprep.mubr.f32.mxu1 %v6257_v27 }
 0x3a3   :  { %5052 = vmatmul.mubr.f32.gmra.mrb[8].mxu1 %v6268_v19 }
 0x3a4   :  { %5056 = vmatprep.mubr.f32.mxu1 %v6090_v6 }
 0x3a7   :  { %5057 = vmatmul.mubr.f32.vlgmr.msra.gmra.mrb[10].mxu1 %v6237_v61 }
 0x3a8   :  { %5069 = vmatpush3.msra.mxu1 %v3346_v50  ;;  %5059 = vmatprep.mubr.f32.mxu1 %v6201_v11 }
 0x3a9   :  { %5082 = vmatprep.subr.mxu1 %v3494_v35 }
 0x3ab   :  { %5060 = vmatmul.mubr.f32.gmra.mrb[4].mxu1 %v6247_v9 }
 0x3ac   :  { %5062 = vmatprep.mubr.f32.mxu1 %v6255_v22 }
 0x3af   :  { %5063 = vmatmul.mubr.f32.gmra.mrb[6].mxu1 %v6266_v13 }
 0x3b0   :  { %5065 = vmatprep.mubr.f32.mxu1 %v6274_v36 }
 0x3b3   :  { %5066 = vmatmul.mubr.f32.gmra.mrb[8].mxu1 %v6285_v57 }
 0x3b4   :  { %5070 = vmatprep.mubr.f32.mxu1 %v6096_v20 }
 0x3b7   :  { %5071 = vmatmul.mubr.f32.vlgmr.msra.gmra.mrb[10].mxu1 %v6250_v62 }
 0x3b8   :  { %5083 = vmatpush3.msra.mxu1 %v3494_v35  ;;  %5073 = vmatprep.mubr.f32.mxu1 %v6206_v18 }
 0x3b9   :  { %5096 = vmatprep.subr.mxu1 %v3346_v50 }
 0x3bb   :  { %5074 = vmatmul.mubr.f32.gmra.mrb[4].mxu1 %v6261_v1 }
 0x3bc   :  { %5076 = vmatprep.mubr.f32.mxu1 %v6271_v25 }
 0x3bf   :  { %5077 = vmatmul.mubr.f32.gmra.mrb[6].mxu1 %v6282_v12 }
 0x3c0   :  { %5079 = vmatprep.mubr.f32.mxu1 %v6290_v39 }
 0x3c3   :  { %5080 = vmatmul.mubr.f32.gmra.mrb[8].mxu1 %v6298_v53 }
 0x3c4   :  { %5084 = vmatprep.mubr.f32.mxu1 %v6078_v48 }
 0x3c7   :  { %5085 = vmatmul.mubr.f32.vlgmr.msra.gmra.mrb[10].mxu1 %v6224_v40 }
 0x3c8   :  { %5097 = vmatpush3.msra.mxu1 %v3346_v50  ;;  %5087 = vmatprep.mubr.f32.mxu1 %v6193_v5 }
 0x3cb   :  { %5088 = vmatmul.mubr.f32.gmra.mrb[4].mxu1 %v6231_v56 }
 0x3cc   :  { %5090 = vmatprep.mubr.f32.mxu1 %v6239_v16 }
 0x3cf   :  { %5091 = vmatmul.mubr.f32.gmra.mrb[6].mxu1 %v6252_v17 }
 0x3d0   :  { %5093 = vmatprep.mubr.f32.mxu1 %v6257_v27 }
 0x3d3   :  { %5094 = vmatmul.mubr.f32.gmra.mrb[8].mxu1 %v6268_v19 }
 0x3d4   :  { %5098 = vmatprep.mubr.f32.mxu1 %v6078_v48 }
 0x3d7   :  { %5099 = vmatmul.mubr.f32.vlgmr.msra.gmra.mrb[10].mxu1 %v6224_v40 }
 0x3d8   :  { %5101 = vmatprep.mubr.f32.mxu1 %v6193_v5 }
 0x3db   :  { %5102 = vmatmul.mubr.f32.gmra.mrb[4].mxu1 %v6231_v56 }
 0x3dc   :  { %5104 = vmatprep.mubr.f32.mxu1 %v6239_v16 }
 0x3df   :  { %5105 = vmatmul.mubr.f32.gmra.mrb[6].mxu1 %v6252_v17 }
 0x3e0   :  { %5107 = vmatprep.mubr.f32.mxu1 %v6257_v27 }
 0x3e3   :  { %5108 = vmatmul.mubr.f32.gmra.mrb[8].mxu1 %v6268_v19 }
 0x45e   :  { %v5030_v6 = vpop.f32.mrb[12].mxu0 }
 0x45f   :  { %v3417_v20 = vpop.f32.mrb[13].mxu0 }
 0x4aa   :  { %v5100_v11 = vpop.f32.mrb[10].mxu1 }
 0x4ab   :  { %v5400_v18 = vadd.f32 %v5100_v11, %v5030_v6  ;;  %v4046_v61 = vpop.f32.mrb[11].mxu1 }
 0x4ac   :  { %v5401_v48 = vadd.f32 %v4046_v61, %v3417_v20 }
 0x4ad   :  { %v4093_v9 = vsub.f32 0.0, %v5400_v18 }
 0x4ae   :  { %v4092_v40 = vsub.f32 0.0, %v5401_v48  ;;  %v5103_v62 = vpop.f32.mrb[4].mxu1 }
 0x4af   :  { %v4102_v5 = vmul.f32 1.442695, %v4093_v9  ;;  %v4095_v22 = vsub.f32 0.0, %v5103_v62  ;;  %v4058_v56 = vpop.f32.mrb[5].mxu1 }
 0x4b0   :  { %v4100_v1 = vmul.f32 1.442695, %v4092_v40  ;;  %v4094_v16 = vsub.f32 0.0, %v4058_v56 }
 0x4b1   :  { %5559 = vpow2.f32 %v4102_v5  ;;  %v4106_v17 = vmul.f32 1.442695, %v4095_v22 }
 0x4b2   :  { %5561 = vpow2.f32 %v4100_v1  ;;  %v4104_v27 = vmul.f32 1.442695, %v4094_v16  ;;  %v5106_v13 = vpop.f32.mrb[6].mxu1 }
 0x4b3   :  { %5563 = vpow2.f32 %v4106_v17  ;;  %v4097_v19 = vsub.f32 0.0, %v5106_v13  ;;  %v4070_v25 = vpop.f32.mrb[7].mxu1 }
 0x4b4   :  { %5565 = vpow2.f32 %v4104_v27  ;;  %v4096_v36 = vsub.f32 0.0, %v4070_v25 }
 0x4b5   :  { %v4110_v26 = vmul.f32 1.442695, %v4097_v19 }
 0x4b6   :  { %v4108_v12 = vmul.f32 1.442695, %v4096_v36  ;;  %v5109_v57 = vpop.f32.mrb[8].mxu1 }
 0x4b7   :  { %5567 = vpow2.f32 %v4110_v26  ;;  %v4099_v39 = vsub.f32 0.0, %v5109_v57  ;;  %v4082_v44 = vpop.f32.mrb[9].mxu1 }
 0x4b8   :  { %5569 = vpow2.f32 %v4108_v12  ;;  %v4098_v53 = vsub.f32 0.0, %v4082_v44 }
 0x4b9   :  { %v4114_v54 = vmul.f32 1.442695, %v4099_v39 }
 0x4ba   :  { %v4112_v24 = vmul.f32 1.442695, %v4098_v53 }
 0x4bb   :  { %v5560_v29 = vpop.eup %5559  ;;  %5571 = vpow2.f32 %v4114_v54 }
 0x4bc   :  { %v5562_v23 = vpop.eup %5561  ;;  %v4117_v28 = vadd.f32 1.0, %v5560_v29  ;;  %5573 = vpow2.f32 %v4112_v24 }
 0x4bd   :  { %v5564_v46 = vpop.eup %5563  ;;  %v4116_v38 = vadd.f32 1.0, %v5562_v23 }
 0x4be   :  { %v5566_v3 = vpop.eup %5565  ;;  %5575 = vrcp.f32 %v4117_v28  ;;  %v4119_v7 = vadd.f32 1.0, %v5564_v46 }
 0x4bf   :  { %5577 = vrcp.f32 %v4116_v38  ;;  %v4118_v41 = vadd.f32 1.0, %v5566_v3 }
 0x4c0   :  { %5579 = vrcp.f32 %v4119_v7 }
 0x4c1   :  { %v5568_v8 = vpop.eup %5567  ;;  %5581 = vrcp.f32 %v4118_v41 }
 0x4c2   :  { %v5570_v60 = vpop.eup %5569  ;;  %v4121_v15 = vadd.f32 1.0, %v5568_v8 }
 0x4c3   :  { %v4120_v21 = vadd.f32 1.0, %v5570_v60 }
 0x4c4   :  { %5583 = vrcp.f32 %v4121_v15 }
 0x4c5   :  { %v5572_v42 = vpop.eup %5571  ;;  %5585 = vrcp.f32 %v4120_v21 }
 0x4c6   :  { %v5574_v43 = vpop.eup %5573  ;;  %v4123_v2 = vadd.f32 1.0, %v5572_v42 }
 0x4c7   :  { %v4122_v45 = vadd.f32 1.0, %v5574_v43 }
 0x4c8   :  { %v5576_v47 = vpop.eup %5575  ;;  %5587 = vrcp.f32 %v4123_v2 }
 0x4c9   :  { %v5578_v55 = vpop.eup %5577  ;;  %4155 = vst.msk [vmem:[%s6601_s3 + $0x48] sm:$0xff] %vm32_vm0, %v5576_v47  ;;  %5589 = vrcp.f32 %v4122_v45 }
 0x4ca   :  { %v5580_v59 = vpop.eup %5579  ;;  %4154 = vst.msk [vmem:[%s6601_s3 + $0x40] sm:$0xff] %vm32_vm0, %v5578_v55 }
 0x4cb   :  { %v5582_v34 = vpop.eup %5581  ;;  %4157 = vst.msk [vmem:[%s6601_s3 + $0x58] sm:$0xff] %vm32_vm0, %v5580_v59 }
 0x4cc   :  { %4156 = vst.msk [vmem:[%s6601_s3 + $0x50] sm:$0xff] %vm32_vm0, %v5582_v34 }
 0x4ce   :  { %v5584_v58 = vpop.eup %5583 }
 0x4cf   :  { %v5586_v0 = vpop.eup %5585  ;;  %4159 = vst.msk [vmem:[%s6601_s3 + $0x68] sm:$0xff] %vm32_vm0, %v5584_v58 }
 0x4d0   :  { %4158 = vst.msk [vmem:[%s6601_s3 + $0x60] sm:$0xff] %vm32_vm0, %v5586_v0 }
 0x4d2   :  { %v5588_v32 = vpop.eup %5587 }
 0x4d3   :  { %v5590_v63 = vpop.eup %5589  ;;  %4161 = vst.msk [vmem:[%s6601_s3 + $0x78] sm:$0xff] %vm32_vm0, %v5588_v32 }
 0x4d4   :  { %4160 = vst.msk [vmem:[%s6601_s3 + $0x70] sm:$0xff] %vm32_vm0, %v5590_v63 }
 0x4d5   :  { %4153 = vsyncpa [#allocation5], 1 }

</bundles_post_ra>
